<compile_context>
chip_gen: v7x
topology: tpu7x:2x2x1
jax: 0.10.0
libtpu: 0.0.40
codegen_flags: <defaults>
</compile_context>

<pallas_src>
import functools

import jax
import jax.numpy as jnp
from jax.experimental import pallas as pl
from jax.experimental.pallas import tpu as pltpu

EMBED_DIM = 32
NUM_HEADS = 4
HEAD_DIM = EMBED_DIM // NUM_HEADS
FF_DIM = 64
NUM_LAYERS = 2
SEQ = 8
BATCH = 2


def _layer_norm(x, gamma, beta, eps=1e-5):
    mean = jnp.mean(x, axis=-1, keepdims=True)
    var = jnp.mean(jnp.square(x - mean), axis=-1, keepdims=True)
    return (x - mean) * jax.lax.rsqrt(var + eps) * gamma + beta


# ---------------------------------------------------------------------------
# Fused encoder kernel.  One grid step processes `bb` sequences through ALL
# layers; the stacked weights live in VMEM for the whole call (constant
# BlockSpec index), and the activation never leaves VMEM between layers.
# ---------------------------------------------------------------------------
def encoder_kernel(x_ref, mask_ref,
                   wqkv_ref, wo_ref, w1_ref, w2_ref, vecs_ref, bvec_ref,
                   o_ref, *, num_heads, num_layers):
    bb, n, d = x_ref.shape
    hd = d // num_heads

    # Additive mask bias built in-kernel from the raw 0/1 mask, once for all
    # layers of this block of sequences.
    bias = (mask_ref[...] - 1.0) * jnp.float32(1e9)        # (bb, n, n)

    # Activation stays a live f32 value across the (unrolled) layer loop.
    x = x_ref[...].reshape(bb * n, d)                       # (bb*n, d)

    for l in range(num_layers):                             # static unroll
        vecs = vecs_ref[l]                                  # (6, d) f32
        g1, be1 = vecs[0:1], vecs[1:2]
        g2, be2 = vecs[2:3], vecs[3:4]
        b_o, b_ff2 = vecs[4:5], vecs[5:6]
        bvec = bvec_ref[l]                                  # (1, 3d+ff) f32
        b_qkv = bvec[:, :3 * d]
        b_f1 = bvec[:, 3 * d:]

        # ---- pre-norm multi-head self-attention ----
        h = _layer_norm(x, g1, be1)
        # bf16 x bf16 -> f32 accumulate (1/sqrt(hd) already folded into Wq/bq)
        qkv = jnp.dot(h.astype(jnp.bfloat16), wqkv_ref[l],
                      preferred_element_type=jnp.float32) + b_qkv  # (bb*n, 3d)

        attn_rows = []
        for b in range(bb):                                 # static unroll
            qkv_b = qkv[b * n:(b + 1) * n]                  # (n, 3d)
            q = qkv_b[:, 0:d].reshape(n, num_heads, hd)
            k = qkv_b[:, d:2 * d].reshape(n, num_heads, hd)
            v = qkv_b[:, 2 * d:3 * d].reshape(n, num_heads, hd)
            # Head-batched contractions; no explicit .transpose() calls.
            s = jnp.einsum('qhd,khd->hqk', q, k,
                           preferred_element_type=jnp.float32)      # (H, n, n)
            s = s + bias[b][None]
            s = s - jnp.max(s, axis=-1, keepdims=True)
            p = jnp.exp(s)
            p = p * pl.reciprocal(jnp.sum(p, axis=-1, keepdims=True),
                                  approx=False)
            o_b = jnp.einsum('hqk,khd->qhd', p, v,
                             preferred_element_type=jnp.float32)    # (n, H, hd)
            attn_rows.append(o_b.reshape(n, d))
        attn = attn_rows[0] if bb == 1 else jnp.concatenate(attn_rows, axis=0)
        attn = jnp.dot(attn.astype(jnp.bfloat16), wo_ref[l],
                       preferred_element_type=jnp.float32) + b_o
        x = x + attn            # residual (dropout: identity in eval mode)

        # ---- pre-norm feed-forward ----
        h2 = _layer_norm(x, g2, be2)
        f = jnp.dot(h2.astype(jnp.bfloat16), w1_ref[l],
                    preferred_element_type=jnp.float32) + b_f1
        f = jnp.maximum(f, 0.0)
        f = jnp.dot(f.astype(jnp.bfloat16), w2_ref[l],
                    preferred_element_type=jnp.float32) + b_ff2
        x = x + f

    o_ref[...] = x.reshape(bb, n, d)


def transformer_encoder(x, mask, packed, *, num_heads, batch_block=1):
    """batch_block=1 keeps the batch axis as a "parallel" grid (dual-TC v7x);
    batch_block=batch folds the batch into a single grid step (v5e/v6e)."""
    m, n, d = x.shape
    if mask is None:
        mask = jnp.ones((m, n, n), jnp.float32)
    num_layers = packed["w_qkv"].shape[0]
    assert m % batch_block == 0
    grid = (m // batch_block,)

    kernel = functools.partial(encoder_kernel, num_heads=num_heads,
                               num_layers=num_layers)

    def seq_spec(shape):
        return pl.BlockSpec(shape, lambda i: (i, 0, 0))

    def full_spec(arr):
        # Whole stacked weight resident in VMEM; constant block index so it is
        # fetched once and never re-DMA'd across grid steps.
        return pl.BlockSpec(arr.shape, lambda i: (0,) * arr.ndim)

    return pl.pallas_call(
        kernel,
        out_shape=jax.ShapeDtypeStruct((m, n, d), jnp.float32),
        grid=grid,
        in_specs=[
            seq_spec((batch_block, n, d)),   # x
            seq_spec((batch_block, n, n)),   # raw mask (bias built in-kernel)
            full_spec(packed["w_qkv"]),      # (L, d, 3d)  bf16
            full_spec(packed["w_o"]),        # (L, d, d)   bf16
            full_spec(packed["w_1"]),        # (L, d, ff)  bf16
            full_spec(packed["w_2"]),        # (L, ff, d)  bf16
            full_spec(packed["vecs"]),       # (L, 6, d)   f32 [g1,b1,g2,b2,bo,bf2]
            full_spec(packed["b_qf"]),       # (L, 1, 3d+ff) f32 [bqkv | bf1]
        ],
        out_specs=seq_spec((batch_block, n, d)),
        compiler_params=pltpu.CompilerParams(
            dimension_semantics=("parallel",)),
    )(x, mask, packed["w_qkv"], packed["w_o"], packed["w_1"], packed["w_2"],
      packed["vecs"], packed["b_qf"])


# ---------------------------------------------------------------------------
# Parameter init (unpacked, per layer) and packing into stacked/fused arrays.
# ---------------------------------------------------------------------------
def init_layer_params(key, d, ff):
    ks = jax.random.split(key, 6)

    def lin(k, fan_in, fan_out):
        w = jax.random.normal(k, (fan_in, fan_out), jnp.float32) / jnp.sqrt(
            jnp.float32(fan_in))
        b = jnp.zeros((1, fan_out), jnp.float32)
        return w, b

    wq, bq = lin(ks[0], d, d)
    wk, bk = lin(ks[1], d, d)
    wv, bv = lin(ks[2], d, d)
    wo, bo = lin(ks[3], d, d)
    g1, be1 = jnp.ones((1, d), jnp.float32), jnp.zeros((1, d), jnp.float32)
    g2, be2 = jnp.ones((1, d), jnp.float32), jnp.zeros((1, d), jnp.float32)
    w1, bf1 = lin(ks[4], d, ff)
    w2, bf2 = lin(ks[5], ff, d)
    return [wq, bq, wk, bk, wv, bv, wo, bo, g1, be1, g2, be2, w1, bf1, w2, bf2]


def pack_layer_params(layer_params_list, num_heads):
    d = layer_params_list[0][0].shape[0]
    hd = d // num_heads
    scale = 1.0 / (hd ** 0.5)

    w_qkv, w_o, w_1, w_2, vecs, b_qf = [], [], [], [], [], []
    for (wq, bq, wk, bk, wv, bv, wo, bo,
         g1, be1, g2, be2, w1, bf1, w2, bf2) in layer_params_list:
        # Fold the 1/sqrt(head_dim) attention scale into the query projection.
        w_qkv.append(jnp.concatenate([wq * scale, wk, wv], axis=1))
        w_o.append(wo)
        w_1.append(w1)
        w_2.append(w2)
        vecs.append(jnp.concatenate([g1, be1, g2, be2, bo, bf2], axis=0))
        b_qf.append(jnp.concatenate([bq * scale, bk, bv, bf1], axis=1))

    def stack(xs, dt):
        return jnp.stack(xs, axis=0).astype(dt)

    # Matrices in bf16 (half the DMA bytes / HBM footprint, bf16-native MXU);
    # vector params stay f32 (elementwise path is f32 on all chips).
    return dict(w_qkv=stack(w_qkv, jnp.bfloat16),
                w_o=stack(w_o, jnp.bfloat16),
                w_1=stack(w_1, jnp.bfloat16),
                w_2=stack(w_2, jnp.bfloat16),
                vecs=stack(vecs, jnp.float32),
                b_qf=stack(b_qf, jnp.float32))


# ---------------------------------------------------------------------------
# Pure-JAX reference (original, unpacked per-layer f32 weights).
# ---------------------------------------------------------------------------
def reference_encoder(x, mask, layer_params_list, num_heads):
    m, n, d = x.shape
    hd = d // num_heads
    bias = (mask - 1.0) * 1e9
    for (wq, bq, wk, bk, wv, bv, wo, bo,
         g1, be1, g2, be2, w1, bf1, w2, bf2) in layer_params_list:
        h = _layer_norm(x, g1, be1)
        q = (h @ wq + bq).reshape(m, n, num_heads, hd).transpose(0, 2, 1, 3)
        k = (h @ wk + bk).reshape(m, n, num_heads, hd).transpose(0, 2, 1, 3)
        v = (h @ wv + bv).reshape(m, n, num_heads, hd).transpose(0, 2, 1, 3)
        s = jnp.einsum('mhqd,mhkd->mhqk', q, k) / jnp.sqrt(jnp.float32(hd))
        s = s + bias[:, None]
        p = jax.nn.softmax(s, axis=-1)
        o = jnp.einsum('mhqk,mhkd->mhqd', p, v)
        o = o.transpose(0, 2, 1, 3).reshape(m, n, d)
        x = x + o @ wo + bo
        h2 = _layer_norm(x, g2, be2)
        f = jnp.maximum(h2 @ w1 + bf1, 0.0)
        x = x + f @ w2 + bf2
    return x


if __name__ == "__main__":
    key = jax.random.PRNGKey(0)
    k_x, k_p = jax.random.split(key)

    x = jax.random.normal(k_x, (BATCH, SEQ, EMBED_DIM), jnp.float32)
    # mask[m, i, j] == 1.0 means token i may attend to token j (causal here,
    # so every query has at least one attendable key).
    mask = jnp.broadcast_to(jnp.tril(jnp.ones((SEQ, SEQ), jnp.float32)),
                            (BATCH, SEQ, SEQ))

    layer_keys = jax.random.split(k_p, NUM_LAYERS)
    layer_params = [init_layer_params(lk, EMBED_DIM, FF_DIM)
                    for lk in layer_keys]
    packed = pack_layer_params(layer_params, NUM_HEADS)

    ref = reference_encoder(x, mask, layer_params, NUM_HEADS)

    def check(out):
        assert out.shape == (BATCH, SEQ, EMBED_DIM)
        assert bool(jnp.all(jnp.isfinite(out)))
        err = jnp.abs(out - ref)
        # Tolerance accounts for bf16 weight matmuls (vs. the f32 reference)
        # accumulated over two encoder layers.
        tol = 1e-1 + 2e-2 * jnp.abs(ref)
        assert bool(jnp.all(err <= tol)), \
            f"max abs error vs reference: {float(jnp.max(err))}"

    # v7x-style: one sequence per grid step, batch axis "parallel" (2 TCs).
    enc_parallel = jax.jit(functools.partial(
        transformer_encoder, num_heads=NUM_HEADS, batch_block=1))
    out_p = jax.block_until_ready(enc_parallel(x, mask, packed))
    check(out_p)

    # v5e/v6e-style: single TensorCore, whole batch folded into one grid step.
    enc_folded = jax.jit(functools.partial(
        transformer_encoder, num_heads=NUM_HEADS, batch_block=BATCH))
    out_f = jax.block_until_ready(enc_folded(x, mask, packed))
    check(out_f)

    print("KERNEL_OK")
</pallas_src>

<mosaic_0001>
module attributes {stable_mosaic.version = 11 : i64} {
  func.func @encoder_kernel(%arg0: i32, %arg1: memref<1x8x32xf32, #tpu.memory_space<vmem>>, %arg2: memref<1x8x8xf32, #tpu.memory_space<vmem>>, %arg3: memref<2x32x96xbf16, #tpu.memory_space<vmem>>, %arg4: memref<2x32x32xbf16, #tpu.memory_space<vmem>>, %arg5: memref<2x32x64xbf16, #tpu.memory_space<vmem>>, %arg6: memref<2x64x32xbf16, #tpu.memory_space<vmem>>, %arg7: memref<2x6x32xf32, #tpu.memory_space<vmem>>, %arg8: memref<2x1x160xf32, #tpu.memory_space<vmem>>, %arg9: memref<1x8x32xf32, #tpu.memory_space<vmem>>) attributes {dimension_semantics = [#tpu.dimension_semantics<parallel>], iteration_bounds = array<i64: 2>, scalar_prefetch = 0 : i64, scratch_operands = 0 : i64, tpu.core_type = #tpu.core_type<tc>, window_params = [{transform_indices = @transform_0, window_bounds = array<i64: 1, 8, 32>}, {transform_indices = @transform_1, window_bounds = array<i64: 1, 8, 8>}, {pipeline_mode = #tpu.pipeline_mode<synchronous>, transform_indices = @transform_2, window_bounds = array<i64: 2, 32, 96>}, {pipeline_mode = #tpu.pipeline_mode<synchronous>, transform_indices = @transform_3, window_bounds = array<i64: 2, 32, 32>}, {pipeline_mode = #tpu.pipeline_mode<synchronous>, transform_indices = @transform_4, window_bounds = array<i64: 2, 32, 64>}, {pipeline_mode = #tpu.pipeline_mode<synchronous>, transform_indices = @transform_5, window_bounds = array<i64: 2, 64, 32>}, {pipeline_mode = #tpu.pipeline_mode<synchronous>, transform_indices = @transform_6, window_bounds = array<i64: 2, 6, 32>}, {pipeline_mode = #tpu.pipeline_mode<synchronous>, transform_indices = @transform_7, window_bounds = array<i64: 2, 1, 160>}, {transform_indices = @transform_8, window_bounds = array<i64: 1, 8, 32>}]} {
    %c0 = arith.constant 0 : index
    %c0_0 = arith.constant 0 : index
    %c0_1 = arith.constant 0 : index
    %0 = vector.load %arg2[%c0, %c0_0, %c0_1] : memref<1x8x8xf32, #tpu.memory_space<vmem>>, vector<1x8x8xf32>
    %cst = arith.constant 1.000000e+00 : f32
    %1 = vector.broadcast %cst : f32 to vector<1x8x8xf32>
    %2 = arith.subf %0, %1 : vector<1x8x8xf32>
    %cst_2 = arith.constant 1.000000e+09 : f32
    %3 = vector.broadcast %cst_2 : f32 to vector<1x8x8xf32>
    %4 = arith.mulf %2, %3 : vector<1x8x8xf32>
    %c0_3 = arith.constant 0 : index
    %c0_4 = arith.constant 0 : index
    %c0_5 = arith.constant 0 : index
    %5 = vector.load %arg1[%c0_3, %c0_4, %c0_5] : memref<1x8x32xf32, #tpu.memory_space<vmem>>, vector<1x8x32xf32>
    %6 = vector.shape_cast %5 : vector<1x8x32xf32> to vector<8x32xf32>
    %c0_6 = arith.constant 0 : index
    %c0_7 = arith.constant 0 : index
    %c0_8 = arith.constant 0 : index
    %7 = vector.load %arg7[%c0_6, %c0_7, %c0_8] : memref<2x6x32xf32, #tpu.memory_space<vmem>>, vector<1x6x32xf32>
    %8 = vector.shape_cast %7 : vector<1x6x32xf32> to vector<6x32xf32>
    %9 = vector.extract_strided_slice %8 {offsets = [0, 0], sizes = [1, 32], strides = [1, 1]} : vector<6x32xf32> to vector<1x32xf32>
    %10 = vector.extract_strided_slice %8 {offsets = [1, 0], sizes = [1, 32], strides = [1, 1]} : vector<6x32xf32> to vector<1x32xf32>
    %11 = vector.extract_strided_slice %8 {offsets = [2, 0], sizes = [1, 32], strides = [1, 1]} : vector<6x32xf32> to vector<1x32xf32>
    %12 = vector.extract_strided_slice %8 {offsets = [3, 0], sizes = [1, 32], strides = [1, 1]} : vector<6x32xf32> to vector<1x32xf32>
    %13 = vector.extract_strided_slice %8 {offsets = [4, 0], sizes = [1, 32], strides = [1, 1]} : vector<6x32xf32> to vector<1x32xf32>
    %14 = vector.extract_strided_slice %8 {offsets = [5, 0], sizes = [1, 32], strides = [1, 1]} : vector<6x32xf32> to vector<1x32xf32>
    %c0_9 = arith.constant 0 : index
    %c0_10 = arith.constant 0 : index
    %c0_11 = arith.constant 0 : index
    %15 = vector.load %arg8[%c0_9, %c0_10, %c0_11] : memref<2x1x160xf32, #tpu.memory_space<vmem>>, vector<1x1x160xf32>
    %16 = vector.shape_cast %15 : vector<1x1x160xf32> to vector<1x160xf32>
    %17 = vector.extract_strided_slice %16 {offsets = [0, 0], sizes = [1, 96], strides = [1, 1]} : vector<1x160xf32> to vector<1x96xf32>
    %18 = vector.extract_strided_slice %16 {offsets = [0, 96], sizes = [1, 64], strides = [1, 1]} : vector<1x160xf32> to vector<1x64xf32>
    %cst_12 = arith.constant dense<0.000000e+00> : vector<8xf32>
    %19 = vector.multi_reduction <add>, %6, %cst_12 [1] : vector<8x32xf32> to vector<8xf32>
    %20 = vector.shape_cast %19 : vector<8xf32> to vector<8x1xf32>
    %cst_13 = arith.constant 3.200000e+01 : f32
    %21 = vector.broadcast %cst_13 : f32 to vector<8x1xf32>
    %22 = arith.divf %20, %21 : vector<8x1xf32>
    %23 = vector.broadcast %22 : vector<8x1xf32> to vector<8x32xf32>
    %24 = arith.subf %6, %23 : vector<8x32xf32>
    %25 = arith.mulf %24, %24 : vector<8x32xf32>
    %cst_14 = arith.constant dense<0.000000e+00> : vector<8xf32>
    %26 = vector.multi_reduction <add>, %25, %cst_14 [1] : vector<8x32xf32> to vector<8xf32>
    %27 = vector.shape_cast %26 : vector<8xf32> to vector<8x1xf32>
    %cst_15 = arith.constant 3.200000e+01 : f32
    %28 = vector.broadcast %cst_15 : f32 to vector<8x1xf32>
    %29 = arith.divf %27, %28 : vector<8x1xf32>
    %30 = vector.broadcast %22 : vector<8x1xf32> to vector<8x32xf32>
    %31 = arith.subf %6, %30 : vector<8x32xf32>
    %cst_16 = arith.constant 9.99999974E-6 : f32
    %32 = vector.broadcast %cst_16 : f32 to vector<8x1xf32>
    %33 = arith.addf %29, %32 : vector<8x1xf32>
    %34 = math.rsqrt %33 : vector<8x1xf32>
    %35 = vector.broadcast %34 : vector<8x1xf32> to vector<8x32xf32>
    %36 = arith.mulf %31, %35 : vector<8x32xf32>
    %37 = vector.broadcast %9 : vector<1x32xf32> to vector<8x32xf32>
    %38 = arith.mulf %36, %37 : vector<8x32xf32>
    %39 = vector.broadcast %10 : vector<1x32xf32> to vector<8x32xf32>
    %40 = arith.addf %38, %39 : vector<8x32xf32>
    %41 = arith.truncf %40 : vector<8x32xf32> to vector<8x32xbf16>
    %c0_17 = arith.constant 0 : index
    %c0_18 = arith.constant 0 : index
    %c0_19 = arith.constant 0 : index
    %42 = vector.load %arg3[%c0_17, %c0_18, %c0_19] : memref<2x32x96xbf16, #tpu.memory_space<vmem>>, vector<1x32x96xbf16>
    %43 = vector.shape_cast %42 : vector<1x32x96xbf16> to vector<32x96xbf16>
    %cst_20 = arith.constant dense<0.000000e+00> : vector<8x96xf32>
    %44 = tpu.matmul %41, %43, %cst_20 {dimension_numbers = #tpu.dot_dimension_numbers<[1], [0], [0], [1], [0, 0, 1, 1], [], []>} : vector<8x32xbf16>, vector<32x96xbf16>, vector<8x96xf32> -> vector<8x96xf32>
    %45 = vector.broadcast %17 : vector<1x96xf32> to vector<8x96xf32>
    %46 = arith.addf %44, %45 : vector<8x96xf32>
    %47 = vector.extract_strided_slice %46 {offsets = [0, 0], sizes = [8, 32], strides = [1, 1]} : vector<8x96xf32> to vector<8x32xf32>
    %48 = vector.shape_cast %47 : vector<8x32xf32> to vector<8x4x8xf32>
    %49 = vector.extract_strided_slice %46 {offsets = [0, 32], sizes = [8, 32], strides = [1, 1]} : vector<8x96xf32> to vector<8x32xf32>
    %50 = vector.shape_cast %49 : vector<8x32xf32> to vector<8x4x8xf32>
    %51 = vector.extract_strided_slice %46 {offsets = [0, 64], sizes = [8, 32], strides = [1, 1]} : vector<8x96xf32> to vector<8x32xf32>
    %52 = vector.shape_cast %51 : vector<8x32xf32> to vector<8x4x8xf32>
    "tpu.trace_start"() <{level = 10 : i32, message = "qhd,khd->hqk"}> : () -> ()
    %cst_21 = arith.constant dense<0.000000e+00> : vector<4x8x8xf32>
    %53 = tpu.matmul %48, %50, %cst_21 {dimension_numbers = #tpu.dot_dimension_numbers<[2], [2], [0], [0], [0, 1, 0, 0, 1, 0], [1], [1]>} : vector<8x4x8xf32>, vector<8x4x8xf32>, vector<4x8x8xf32> -> vector<4x8x8xf32>
    "tpu.trace_stop"() : () -> ()
    %54 = vector.shape_cast %4 : vector<1x8x8xf32> to vector<8x8xf32>
    %55 = vector.shape_cast %54 : vector<8x8xf32> to vector<1x8x8xf32>
    %56 = vector.broadcast %55 : vector<1x8x8xf32> to vector<4x8x8xf32>
    %57 = arith.addf %53, %56 : vector<4x8x8xf32>
    %cst_22 = arith.constant dense<0xFF800000> : vector<4x8xf32>
    %58 = vector.multi_reduction <maximumf>, %57, %cst_22 [2] : vector<4x8x8xf32> to vector<4x8xf32>
    %59 = vector.shape_cast %58 : vector<4x8xf32> to vector<4x8x1xf32>
    %60 = vector.broadcast %59 : vector<4x8x1xf32> to vector<4x8x8xf32>
    %61 = arith.subf %57, %60 : vector<4x8x8xf32>
    %62 = math.exp %61 : vector<4x8x8xf32>
    %cst_23 = arith.constant dense<0.000000e+00> : vector<4x8xf32>
    %63 = vector.multi_reduction <add>, %62, %cst_23 [2] : vector<4x8x8xf32> to vector<4x8xf32>
    %64 = vector.shape_cast %63 : vector<4x8xf32> to vector<4x8x1xf32>
    %65 = tpu.reciprocal %64 : vector<4x8x1xf32> -> vector<4x8x1xf32>
    %66 = vector.broadcast %65 : vector<4x8x1xf32> to vector<4x8x8xf32>
    %67 = arith.mulf %62, %66 : vector<4x8x8xf32>
    "tpu.trace_start"() <{level = 10 : i32, message = "hqk,khd->qhd"}> : () -> ()
    %cst_24 = arith.constant dense<0.000000e+00> : vector<4x8x8xf32>
    %68 = tpu.matmul %52, %67, %cst_24 {dimension_numbers = #tpu.dot_dimension_numbers<[0], [2], [2], [1], [0, 1, 0, 2, 1, 1], [1], [0]>} : vector<8x4x8xf32>, vector<4x8x8xf32>, vector<4x8x8xf32> -> vector<4x8x8xf32>
    %69 = tpu.transpose %68, [2, 0, 1] : vector<4x8x8xf32> -> vector<8x4x8xf32>
    "tpu.trace_stop"() : () -> ()
    %70 = vector.shape_cast %69 : vector<8x4x8xf32> to vector<8x32xf32>
    %71 = arith.truncf %70 : vector<8x32xf32> to vector<8x32xbf16>
    %c0_25 = arith.constant 0 : index
    %c0_26 = arith.constant 0 : index
    %c0_27 = arith.constant 0 : index
    %72 = vector.load %arg4[%c0_25, %c0_26, %c0_27] : memref<2x32x32xbf16, #tpu.memory_space<vmem>>, vector<1x32x32xbf16>
    %73 = vector.shape_cast %72 : vector<1x32x32xbf16> to vector<32x32xbf16>
    %cst_28 = arith.constant dense<0.000000e+00> : vector<8x32xf32>
    %74 = tpu.matmul %71, %73, %cst_28 {dimension_numbers = #tpu.dot_dimension_numbers<[1], [0], [0], [1], [0, 0, 1, 1], [], []>} : vector<8x32xbf16>, vector<32x32xbf16>, vector<8x32xf32> -> vector<8x32xf32>
    %75 = vector.broadcast %13 : vector<1x32xf32> to vector<8x32xf32>
    %76 = arith.addf %74, %75 : vector<8x32xf32>
    %77 = arith.addf %6, %76 : vector<8x32xf32>
    %cst_29 = arith.constant dense<0.000000e+00> : vector<8xf32>
    %78 = vector.multi_reduction <add>, %77, %cst_29 [1] : vector<8x32xf32> to vector<8xf32>
    %79 = vector.shape_cast %78 : vector<8xf32> to vector<8x1xf32>
    %cst_30 = arith.constant 3.200000e+01 : f32
    %80 = vector.broadcast %cst_30 : f32 to vector<8x1xf32>
    %81 = arith.divf %79, %80 : vector<8x1xf32>
    %82 = vector.broadcast %81 : vector<8x1xf32> to vector<8x32xf32>
    %83 = arith.subf %77, %82 : vector<8x32xf32>
    %84 = arith.mulf %83, %83 : vector<8x32xf32>
    %cst_31 = arith.constant dense<0.000000e+00> : vector<8xf32>
    %85 = vector.multi_reduction <add>, %84, %cst_31 [1] : vector<8x32xf32> to vector<8xf32>
    %86 = vector.shape_cast %85 : vector<8xf32> to vector<8x1xf32>
    %cst_32 = arith.constant 3.200000e+01 : f32
    %87 = vector.broadcast %cst_32 : f32 to vector<8x1xf32>
    %88 = arith.divf %86, %87 : vector<8x1xf32>
    %89 = vector.broadcast %81 : vector<8x1xf32> to vector<8x32xf32>
    %90 = arith.subf %77, %89 : vector<8x32xf32>
    %cst_33 = arith.constant 9.99999974E-6 : f32
    %91 = vector.broadcast %cst_33 : f32 to vector<8x1xf32>
    %92 = arith.addf %88, %91 : vector<8x1xf32>
    %93 = math.rsqrt %92 : vector<8x1xf32>
    %94 = vector.broadcast %93 : vector<8x1xf32> to vector<8x32xf32>
    %95 = arith.mulf %90, %94 : vector<8x32xf32>
    %96 = vector.broadcast %11 : vector<1x32xf32> to vector<8x32xf32>
    %97 = arith.mulf %95, %96 : vector<8x32xf32>
    %98 = vector.broadcast %12 : vector<1x32xf32> to vector<8x32xf32>
    %99 = arith.addf %97, %98 : vector<8x32xf32>
    %100 = arith.truncf %99 : vector<8x32xf32> to vector<8x32xbf16>
    %c0_34 = arith.constant 0 : index
    %c0_35 = arith.constant 0 : index
    %c0_36 = arith.constant 0 : index
    %101 = vector.load %arg5[%c0_34, %c0_35, %c0_36] : memref<2x32x64xbf16, #tpu.memory_space<vmem>>, vector<1x32x64xbf16>
    %102 = vector.shape_cast %101 : vector<1x32x64xbf16> to vector<32x64xbf16>
    %cst_37 = arith.constant dense<0.000000e+00> : vector<8x64xf32>
    %103 = tpu.matmul %100, %102, %cst_37 {dimension_numbers = #tpu.dot_dimension_numbers<[1], [0], [0], [1], [0, 0, 1, 1], [], []>} : vector<8x32xbf16>, vector<32x64xbf16>, vector<8x64xf32> -> vector<8x64xf32>
    %104 = vector.broadcast %18 : vector<1x64xf32> to vector<8x64xf32>
    %105 = arith.addf %103, %104 : vector<8x64xf32>
    %cst_38 = arith.constant 0.000000e+00 : f32
    %106 = vector.broadcast %cst_38 : f32 to vector<8x64xf32>
    %107 = arith.maximumf %105, %106 : vector<8x64xf32>
    %108 = arith.truncf %107 : vector<8x64xf32> to vector<8x64xbf16>
    %c0_39 = arith.constant 0 : index
    %c0_40 = arith.constant 0 : index
    %c0_41 = arith.constant 0 : index
    %109 = vector.load %arg6[%c0_39, %c0_40, %c0_41] : memref<2x64x32xbf16, #tpu.memory_space<vmem>>, vector<1x64x32xbf16>
    %110 = vector.shape_cast %109 : vector<1x64x32xbf16> to vector<64x32xbf16>
    %cst_42 = arith.constant dense<0.000000e+00> : vector<8x32xf32>
    %111 = tpu.matmul %108, %110, %cst_42 {dimension_numbers = #tpu.dot_dimension_numbers<[1], [0], [0], [1], [0, 0, 1, 1], [], []>} : vector<8x64xbf16>, vector<64x32xbf16>, vector<8x32xf32> -> vector<8x32xf32>
    %112 = vector.broadcast %14 : vector<1x32xf32> to vector<8x32xf32>
    %113 = arith.addf %111, %112 : vector<8x32xf32>
    %114 = arith.addf %77, %113 : vector<8x32xf32>
    %c1 = arith.constant 1 : index
    %c0_43 = arith.constant 0 : index
    %c0_44 = arith.constant 0 : index
    %115 = vector.load %arg7[%c1, %c0_43, %c0_44] : memref<2x6x32xf32, #tpu.memory_space<vmem>>, vector<1x6x32xf32>
    %116 = vector.shape_cast %115 : vector<1x6x32xf32> to vector<6x32xf32>
    %117 = vector.extract_strided_slice %116 {offsets = [0, 0], sizes = [1, 32], strides = [1, 1]} : vector<6x32xf32> to vector<1x32xf32>
    %118 = vector.extract_strided_slice %116 {offsets = [1, 0], sizes = [1, 32], strides = [1, 1]} : vector<6x32xf32> to vector<1x32xf32>
    %119 = vector.extract_strided_slice %116 {offsets = [2, 0], sizes = [1, 32], strides = [1, 1]} : vector<6x32xf32> to vector<1x32xf32>
    %120 = vector.extract_strided_slice %116 {offsets = [3, 0], sizes = [1, 32], strides = [1, 1]} : vector<6x32xf32> to vector<1x32xf32>
    %121 = vector.extract_strided_slice %116 {offsets = [4, 0], sizes = [1, 32], strides = [1, 1]} : vector<6x32xf32> to vector<1x32xf32>
    %122 = vector.extract_strided_slice %116 {offsets = [5, 0], sizes = [1, 32], strides = [1, 1]} : vector<6x32xf32> to vector<1x32xf32>
    %c1_45 = arith.constant 1 : index
    %c0_46 = arith.constant 0 : index
    %c0_47 = arith.constant 0 : index
    %123 = vector.load %arg8[%c1_45, %c0_46, %c0_47] : memref<2x1x160xf32, #tpu.memory_space<vmem>>, vector<1x1x160xf32>
    %124 = vector.shape_cast %123 : vector<1x1x160xf32> to vector<1x160xf32>
    %125 = vector.extract_strided_slice %124 {offsets = [0, 0], sizes = [1, 96], strides = [1, 1]} : vector<1x160xf32> to vector<1x96xf32>
    %126 = vector.extract_strided_slice %124 {offsets = [0, 96], sizes = [1, 64], strides = [1, 1]} : vector<1x160xf32> to vector<1x64xf32>
    %cst_48 = arith.constant dense<0.000000e+00> : vector<8xf32>
    %127 = vector.multi_reduction <add>, %114, %cst_48 [1] : vector<8x32xf32> to vector<8xf32>
    %128 = vector.shape_cast %127 : vector<8xf32> to vector<8x1xf32>
    %cst_49 = arith.constant 3.200000e+01 : f32
    %129 = vector.broadcast %cst_49 : f32 to vector<8x1xf32>
    %130 = arith.divf %128, %129 : vector<8x1xf32>
    %131 = vector.broadcast %130 : vector<8x1xf32> to vector<8x32xf32>
    %132 = arith.subf %114, %131 : vector<8x32xf32>
    %133 = arith.mulf %132, %132 : vector<8x32xf32>
    %cst_50 = arith.constant dense<0.000000e+00> : vector<8xf32>
    %134 = vector.multi_reduction <add>, %133, %cst_50 [1] : vector<8x32xf32> to vector<8xf32>
    %135 = vector.shape_cast %134 : vector<8xf32> to vector<8x1xf32>
    %cst_51 = arith.constant 3.200000e+01 : f32
    %136 = vector.broadcast %cst_51 : f32 to vector<8x1xf32>
    %137 = arith.divf %135, %136 : vector<8x1xf32>
    %138 = vector.broadcast %130 : vector<8x1xf32> to vector<8x32xf32>
    %139 = arith.subf %114, %138 : vector<8x32xf32>
    %cst_52 = arith.constant 9.99999974E-6 : f32
    %140 = vector.broadcast %cst_52 : f32 to vector<8x1xf32>
    %141 = arith.addf %137, %140 : vector<8x1xf32>
    %142 = math.rsqrt %141 : vector<8x1xf32>
    %143 = vector.broadcast %142 : vector<8x1xf32> to vector<8x32xf32>
    %144 = arith.mulf %139, %143 : vector<8x32xf32>
    %145 = vector.broadcast %117 : vector<1x32xf32> to vector<8x32xf32>
    %146 = arith.mulf %144, %145 : vector<8x32xf32>
    %147 = vector.broadcast %118 : vector<1x32xf32> to vector<8x32xf32>
    %148 = arith.addf %146, %147 : vector<8x32xf32>
    %149 = arith.truncf %148 : vector<8x32xf32> to vector<8x32xbf16>
    %c1_53 = arith.constant 1 : index
    %c0_54 = arith.constant 0 : index
    %c0_55 = arith.constant 0 : index
    %150 = vector.load %arg3[%c1_53, %c0_54, %c0_55] : memref<2x32x96xbf16, #tpu.memory_space<vmem>>, vector<1x32x96xbf16>
    %151 = vector.shape_cast %150 : vector<1x32x96xbf16> to vector<32x96xbf16>
    %cst_56 = arith.constant dense<0.000000e+00> : vector<8x96xf32>
    %152 = tpu.matmul %149, %151, %cst_56 {dimension_numbers = #tpu.dot_dimension_numbers<[1], [0], [0], [1], [0, 0, 1, 1], [], []>} : vector<8x32xbf16>, vector<32x96xbf16>, vector<8x96xf32> -> vector<8x96xf32>
    %153 = vector.broadcast %125 : vector<1x96xf32> to vector<8x96xf32>
    %154 = arith.addf %152, %153 : vector<8x96xf32>
    %155 = vector.extract_strided_slice %154 {offsets = [0, 0], sizes = [8, 32], strides = [1, 1]} : vector<8x96xf32> to vector<8x32xf32>
    %156 = vector.shape_cast %155 : vector<8x32xf32> to vector<8x4x8xf32>
    %157 = vector.extract_strided_slice %154 {offsets = [0, 32], sizes = [8, 32], strides = [1, 1]} : vector<8x96xf32> to vector<8x32xf32>
    %158 = vector.shape_cast %157 : vector<8x32xf32> to vector<8x4x8xf32>
    %159 = vector.extract_strided_slice %154 {offsets = [0, 64], sizes = [8, 32], strides = [1, 1]} : vector<8x96xf32> to vector<8x32xf32>
    %160 = vector.shape_cast %159 : vector<8x32xf32> to vector<8x4x8xf32>
    "tpu.trace_start"() <{level = 10 : i32, message = "qhd,khd->hqk"}> : () -> ()
    %cst_57 = arith.constant dense<0.000000e+00> : vector<4x8x8xf32>
    %161 = tpu.matmul %156, %158, %cst_57 {dimension_numbers = #tpu.dot_dimension_numbers<[2], [2], [0], [0], [0, 1, 0, 0, 1, 0], [1], [1]>} : vector<8x4x8xf32>, vector<8x4x8xf32>, vector<4x8x8xf32> -> vector<4x8x8xf32>
    "tpu.trace_stop"() : () -> ()
    %162 = vector.shape_cast %4 : vector<1x8x8xf32> to vector<8x8xf32>
    %163 = vector.shape_cast %162 : vector<8x8xf32> to vector<1x8x8xf32>
    %164 = vector.broadcast %163 : vector<1x8x8xf32> to vector<4x8x8xf32>
    %165 = arith.addf %161, %164 : vector<4x8x8xf32>
    %cst_58 = arith.constant dense<0xFF800000> : vector<4x8xf32>
    %166 = vector.multi_reduction <maximumf>, %165, %cst_58 [2] : vector<4x8x8xf32> to vector<4x8xf32>
    %167 = vector.shape_cast %166 : vector<4x8xf32> to vector<4x8x1xf32>
    %168 = vector.broadcast %167 : vector<4x8x1xf32> to vector<4x8x8xf32>
    %169 = arith.subf %165, %168 : vector<4x8x8xf32>
    %170 = math.exp %169 : vector<4x8x8xf32>
    %cst_59 = arith.constant dense<0.000000e+00> : vector<4x8xf32>
    %171 = vector.multi_reduction <add>, %170, %cst_59 [2] : vector<4x8x8xf32> to vector<4x8xf32>
    %172 = vector.shape_cast %171 : vector<4x8xf32> to vector<4x8x1xf32>
    %173 = tpu.reciprocal %172 : vector<4x8x1xf32> -> vector<4x8x1xf32>
    %174 = vector.broadcast %173 : vector<4x8x1xf32> to vector<4x8x8xf32>
    %175 = arith.mulf %170, %174 : vector<4x8x8xf32>
    "tpu.trace_start"() <{level = 10 : i32, message = "hqk,khd->qhd"}> : () -> ()
    %cst_60 = arith.constant dense<0.000000e+00> : vector<4x8x8xf32>
    %176 = tpu.matmul %160, %175, %cst_60 {dimension_numbers = #tpu.dot_dimension_numbers<[0], [2], [2], [1], [0, 1, 0, 2, 1, 1], [1], [0]>} : vector<8x4x8xf32>, vector<4x8x8xf32>, vector<4x8x8xf32> -> vector<4x8x8xf32>
    %177 = tpu.transpose %176, [2, 0, 1] : vector<4x8x8xf32> -> vector<8x4x8xf32>
    "tpu.trace_stop"() : () -> ()
    %178 = vector.shape_cast %177 : vector<8x4x8xf32> to vector<8x32xf32>
    %179 = arith.truncf %178 : vector<8x32xf32> to vector<8x32xbf16>
    %c1_61 = arith.constant 1 : index
    %c0_62 = arith.constant 0 : index
    %c0_63 = arith.constant 0 : index
    %180 = vector.load %arg4[%c1_61, %c0_62, %c0_63] : memref<2x32x32xbf16, #tpu.memory_space<vmem>>, vector<1x32x32xbf16>
    %181 = vector.shape_cast %180 : vector<1x32x32xbf16> to vector<32x32xbf16>
    %cst_64 = arith.constant dense<0.000000e+00> : vector<8x32xf32>
    %182 = tpu.matmul %179, %181, %cst_64 {dimension_numbers = #tpu.dot_dimension_numbers<[1], [0], [0], [1], [0, 0, 1, 1], [], []>} : vector<8x32xbf16>, vector<32x32xbf16>, vector<8x32xf32> -> vector<8x32xf32>
    %183 = vector.broadcast %121 : vector<1x32xf32> to vector<8x32xf32>
    %184 = arith.addf %182, %183 : vector<8x32xf32>
    %185 = arith.addf %114, %184 : vector<8x32xf32>
    %cst_65 = arith.constant dense<0.000000e+00> : vector<8xf32>
    %186 = vector.multi_reduction <add>, %185, %cst_65 [1] : vector<8x32xf32> to vector<8xf32>
    %187 = vector.shape_cast %186 : vector<8xf32> to vector<8x1xf32>
    %cst_66 = arith.constant 3.200000e+01 : f32
    %188 = vector.broadcast %cst_66 : f32 to vector<8x1xf32>
    %189 = arith.divf %187, %188 : vector<8x1xf32>
    %190 = vector.broadcast %189 : vector<8x1xf32> to vector<8x32xf32>
    %191 = arith.subf %185, %190 : vector<8x32xf32>
    %192 = arith.mulf %191, %191 : vector<8x32xf32>
    %cst_67 = arith.constant dense<0.000000e+00> : vector<8xf32>
    %193 = vector.multi_reduction <add>, %192, %cst_67 [1] : vector<8x32xf32> to vector<8xf32>
    %194 = vector.shape_cast %193 : vector<8xf32> to vector<8x1xf32>
    %cst_68 = arith.constant 3.200000e+01 : f32
    %195 = vector.broadcast %cst_68 : f32 to vector<8x1xf32>
    %196 = arith.divf %194, %195 : vector<8x1xf32>
    %197 = vector.broadcast %189 : vector<8x1xf32> to vector<8x32xf32>
    %198 = arith.subf %185, %197 : vector<8x32xf32>
    %cst_69 = arith.constant 9.99999974E-6 : f32
    %199 = vector.broadcast %cst_69 : f32 to vector<8x1xf32>
    %200 = arith.addf %196, %199 : vector<8x1xf32>
    %201 = math.rsqrt %200 : vector<8x1xf32>
    %202 = vector.broadcast %201 : vector<8x1xf32> to vector<8x32xf32>
    %203 = arith.mulf %198, %202 : vector<8x32xf32>
    %204 = vector.broadcast %119 : vector<1x32xf32> to vector<8x32xf32>
    %205 = arith.mulf %203, %204 : vector<8x32xf32>
    %206 = vector.broadcast %120 : vector<1x32xf32> to vector<8x32xf32>
    %207 = arith.addf %205, %206 : vector<8x32xf32>
    %208 = arith.truncf %207 : vector<8x32xf32> to vector<8x32xbf16>
    %c1_70 = arith.constant 1 : index
    %c0_71 = arith.constant 0 : index
    %c0_72 = arith.constant 0 : index
    %209 = vector.load %arg5[%c1_70, %c0_71, %c0_72] : memref<2x32x64xbf16, #tpu.memory_space<vmem>>, vector<1x32x64xbf16>
    %210 = vector.shape_cast %209 : vector<1x32x64xbf16> to vector<32x64xbf16>
    %cst_73 = arith.constant dense<0.000000e+00> : vector<8x64xf32>
    %211 = tpu.matmul %208, %210, %cst_73 {dimension_numbers = #tpu.dot_dimension_numbers<[1], [0], [0], [1], [0, 0, 1, 1], [], []>} : vector<8x32xbf16>, vector<32x64xbf16>, vector<8x64xf32> -> vector<8x64xf32>
    %212 = vector.broadcast %126 : vector<1x64xf32> to vector<8x64xf32>
    %213 = arith.addf %211, %212 : vector<8x64xf32>
    %cst_74 = arith.constant 0.000000e+00 : f32
    %214 = vector.broadcast %cst_74 : f32 to vector<8x64xf32>
    %215 = arith.maximumf %213, %214 : vector<8x64xf32>
    %216 = arith.truncf %215 : vector<8x64xf32> to vector<8x64xbf16>
    %c1_75 = arith.constant 1 : index
    %c0_76 = arith.constant 0 : index
    %c0_77 = arith.constant 0 : index
    %217 = vector.load %arg6[%c1_75, %c0_76, %c0_77] : memref<2x64x32xbf16, #tpu.memory_space<vmem>>, vector<1x64x32xbf16>
    %218 = vector.shape_cast %217 : vector<1x64x32xbf16> to vector<64x32xbf16>
    %cst_78 = arith.constant dense<0.000000e+00> : vector<8x32xf32>
    %219 = tpu.matmul %216, %218, %cst_78 {dimension_numbers = #tpu.dot_dimension_numbers<[1], [0], [0], [1], [0, 0, 1, 1], [], []>} : vector<8x64xbf16>, vector<64x32xbf16>, vector<8x32xf32> -> vector<8x32xf32>
    %220 = vector.broadcast %122 : vector<1x32xf32> to vector<8x32xf32>
    %221 = arith.addf %219, %220 : vector<8x32xf32>
    %222 = arith.addf %185, %221 : vector<8x32xf32>
    %223 = vector.shape_cast %222 : vector<8x32xf32> to vector<1x8x32xf32>
    %c0_79 = arith.constant 0 : index
    %c0_80 = arith.constant 0 : index
    %c0_81 = arith.constant 0 : index
    %224 = vector.load %arg9[%c0_79, %c0_80, %c0_81] : memref<1x8x32xf32, #tpu.memory_space<vmem>>, vector<1x8x32xf32>
    tpu.vector_store %arg9[%c0_79, %c0_80, %c0_81], %223 {strides = array<i32>} : memref<1x8x32xf32, #tpu.memory_space<vmem>>, vector<1x8x32xf32>,
    return
  }
  func.func @transform_0(%arg0: i32) -> (i32, i32, i32) {
    %c0_i32 = arith.constant 0 : i32
    %c0_i32_0 = arith.constant 0 : i32
    %c0_i32_1 = arith.constant 0 : i32
    return %arg0, %c0_i32, %c0_i32_0 : i32, i32, i32
  }
  func.func @transform_1(%arg0: i32) -> (i32, i32, i32) {
    %c0_i32 = arith.constant 0 : i32
    %c0_i32_0 = arith.constant 0 : i32
    %c0_i32_1 = arith.constant 0 : i32
    return %arg0, %c0_i32, %c0_i32_0 : i32, i32, i32
  }
  func.func @transform_2(%arg0: i32) -> (i32, i32, i32) {
    %c0_i32 = arith.constant 0 : i32
    %c0_i32_0 = arith.constant 0 : i32
    %c0_i32_1 = arith.constant 0 : i32
    %c0_i32_2 = arith.constant 0 : i32
    return %c0_i32, %c0_i32_0, %c0_i32_1 : i32, i32, i32
  }
  func.func @transform_3(%arg0: i32) -> (i32, i32, i32) {
    %c0_i32 = arith.constant 0 : i32
    %c0_i32_0 = arith.constant 0 : i32
    %c0_i32_1 = arith.constant 0 : i32
    %c0_i32_2 = arith.constant 0 : i32
    return %c0_i32, %c0_i32_0, %c0_i32_1 : i32, i32, i32
  }
  func.func @transform_4(%arg0: i32) -> (i32, i32, i32) {
    %c0_i32 = arith.constant 0 : i32
    %c0_i32_0 = arith.constant 0 : i32
    %c0_i32_1 = arith.constant 0 : i32
    %c0_i32_2 = arith.constant 0 : i32
    return %c0_i32, %c0_i32_0, %c0_i32_1 : i32, i32, i32
  }
  func.func @transform_5(%arg0: i32) -> (i32, i32, i32) {
    %c0_i32 = arith.constant 0 : i32
    %c0_i32_0 = arith.constant 0 : i32
    %c0_i32_1 = arith.constant 0 : i32
    %c0_i32_2 = arith.constant 0 : i32
    return %c0_i32, %c0_i32_0, %c0_i32_1 : i32, i32, i32
  }
  func.func @transform_6(%arg0: i32) -> (i32, i32, i32) {
    %c0_i32 = arith.constant 0 : i32
    %c0_i32_0 = arith.constant 0 : i32
    %c0_i32_1 = arith.constant 0 : i32
    %c0_i32_2 = arith.constant 0 : i32
    return %c0_i32, %c0_i32_0, %c0_i32_1 : i32, i32, i32
  }
  func.func @transform_7(%arg0: i32) -> (i32, i32, i32) {
    %c0_i32 = arith.constant 0 : i32
    %c0_i32_0 = arith.constant 0 : i32
    %c0_i32_1 = arith.constant 0 : i32
    %c0_i32_2 = arith.constant 0 : i32
    return %c0_i32, %c0_i32_0, %c0_i32_1 : i32, i32, i32
  }
  func.func @transform_8(%arg0: i32) -> (i32, i32, i32) {
    %c0_i32 = arith.constant 0 : i32
    %c0_i32_0 = arith.constant 0 : i32
    %c0_i32_1 = arith.constant 0 : i32
    return %arg0, %c0_i32, %c0_i32_0 : i32, i32, i32
  }
}

</mosaic_0001>

<bundles_post_ra>
// kernel: transformer_encoder.1
= control target key start
LH: loop header
LB: loop body
LE: loop exit
PB: predicated region body
PF: predicated region fallthrough
CT: control target
= control target key end

     0   :  { %s4780_s0 = inlined_call_operand.hbm [shape: f32[2,8,32], index: 0, kind: input, shape index: {}]   ;;  %s4781_s1 = inlined_call_operand.hbm [shape: f32[2,8,8], index: 1, kind: input, shape index: {}]   ;;  %s4782_s2 = inlined_call_operand.vmem [shape: bf16[2,32,96], index: 2, kind: input, shape index: {}]   ;;  %s4783_s3 = inlined_call_operand.vmem [shape: bf16[2,32,32], index: 3, kind: input, shape index: {}]   ;;  %s4784_s4 = inlined_call_operand.vmem [shape: bf16[2,32,64], index: 4, kind: input, shape index: {}]   ;;  %s4785_s5 = inlined_call_operand.vmem [shape: bf16[2,64,32], index: 5, kind: input, shape index: {}]   ;;  %s4786_s6 = inlined_call_operand.vmem [shape: f32[2,6,32], index: 6, kind: input, shape index: {}]   ;;  %s4787_s7 = inlined_call_operand.vmem [shape: f32[2,1,160], index: 7, kind: input, shape index: {}]   ;;  %s4788_s8 = inlined_call_operand.hbm [shape: f32[2,8,32], index: 8, kind: output, shape index: {}]  }
   0x1   :  { %4795 = sst [smem:[#allocation12_spill]] %s4780_s0 }
   0x2   :  { %13 = vsyncpa [#allocation3], 0 }
   0x3   :  { %15 = vsyncpa [#allocation3 + $0x1], 0 }
   0x4   :  { %16 = vsyncpa [#allocation6], 0 }
   0x5   :  { %18 = vsyncpa [#allocation6 + $0x1], 0 }
   0x6   :  { %19 = vsyncpa [#allocation4], 0 }
   0x7   :  { %21 = vsyncpa [#allocation4 + $0x1], 0  ;;  %s4172_s27 = smov 0   ;;  %s4174_s28 = smov 0  }
   0x8   :  { %s4176_s29 = smov 0   ;;  %s4178_s30 = smov 0  }
   0x9 LB: > { %s4193_s9 = sadd.s32 4294967295, %s4109_s30   ;;  %s3549_s10 = sadd.s32 4294967294, %s4109_s30   ;;  %s4109_s30 = sphi %s4178_s30, %s4819_s30   ;;  %s4105_s29 = sphi %s4176_s29, %s4818_s29   ;;  %s4101_s28 = sphi %s4174_s28, %s4817_s28   ;;  %s4097_s27 = sphi %s4172_s27, %s4816_s27  }
   0xa   : > { %s4197_s11 = sadd.s32 1, %s4109_s30   ;;  %s34_s12 = sadd.s32 1, %s4105_s29 }
   0xb   : > { %s31_s13 = ssub.s32 %s4109_s30, %s4197_s11  ;;  %p41_p0 = scmp.ne.s32.totalorder %s4105_s29, %s4101_s28 }
   0xc   : > { %p32_p1 = scmp.eq.s32.totalorder %s31_s13, 0  ;;  %p42_p2 = scmp.eq.s32.totalorder %s4109_s30, 0 }
   0xd   : > { %p47_p3 = scmp.ne.s32.totalorder %s4101_s28, %s4097_s27  ;;  %p48_p4 = scmp.eq.s32.totalorder %s4193_s9, 0 }
   0xe   : > { %s4209_s14 = scalar_select %p32_p1, %s4105_s29, %s34_s12  }
   0xf   : > { %p4211_p5 = por %p42_p2, %p41_p0  ;;  %p4215_p6 = por %p48_p4, %p47_p3 }
  0x10   : > { %4796 = sst [smem:[#allocation11_spill]] %s4209_s14  ;;  %p223_p7 = scmp.eq.s32.totalorder %s4193_s9, 1 }
  0x11   : > { %s4798_s16 = scalar_select %p4215_p6, 1, 0 }
  0x12   : > { %p229_p8 = scmp.eq.s32.totalorder %s3549_s10, 1  ;;  %p3872_p10 = scmp.lt.s32.totalorder %s4109_s30, 2 }
  0x13   : > { %p4222_p11 = por %p223_p7, %p41_p0  ;;  %s4231_s19 = sand.u32 1, %s4105_s29  }
  0x14   : > { %p4226_p12 = por %p229_p8, %p47_p3  ;;  %s4790_s20 = sshll.u32 %s4109_s30, 7 }
  0x15   : > { %s4799_s17 = scalar_select %p4222_p11, 1, 0 }
  0x16   : > { %s4800_s18 = scalar_select %p4226_p12, 1, 0 }
  0x17   : > { %s4789_s21 = sshll.u32 %s4231_s19, 3  ;;  %s4801_s0 = sld [smem:[#allocation12_spill]] }
  0x18   : > { %s271_s25 = scalar_lea.vmem [#allocation2], %s4789_s21  ;;  %p4246_p13 = pnand %p3872_p10, %p4211_p5 }
  0x19   : > { %s278_s26 = sshll.u32 %s271_s25, 4  ;;  %s268_s12 = scalar_lea.sflag [#allocation3], %s4231_s19  ;;  %s4250_s26 = int_to_ptr.vmem [resolvable:$true] %s278_s26 }
  0x1a   : > { %p3981_p3 = pneg %p4246_p13 }
  0x1d   : > { %s4240_s24 = scalar_lea.hbm %s4801_s0, %s4790_s20  ;;  %s3984_s23 = scalar_lea.hbm %s4801_s0, 256 }
  0x1e   : > { %s3979_s13 = scalar_lea.hbm %s4240_s24, 128  ;;  %p3985_p5 = scmp.lt.u32.totalorder %s4240_s24, %s4801_s0 }
  0x1f   : > { %p3980_p2 = scmp.ne.s32.totalorder %s4240_s24, %s3979_s13  ;;  %p3986_p8 = scmp.lt.u32.totalorder %s3984_s23, %s3979_s13 }
  0x20   : > { %p3988_p9 = scmp.lt.u32.totalorder %s3979_s13, %s4240_s24 }
  0x21   : > { %p3982_p4 = pnand %p3981_p3, %p3980_p2  ;;  %p3987_p10 = por %p3986_p8, %p3985_p5 }
  0x23   : > { %p3983_p7 = pneg %p3982_p4  ;;  %p3989_p0 = por %p3988_p9, %p3987_p10 }
  0x25   : > { %p3990_p1 = pnand %p3989_p0, %p3983_p7 }
  0x27   : > { %3993 = shalt.err (!%p3990_p1)
}
  0x28   : > { %s3994_s20 = scalar_lea.vmem %s4250_s26, 128  ;;  %s4111_s15 = smov [#allocation2]  }
  0x29   : > { %p3995_p2 = scmp.ne.s32.totalorder %s4250_s26, %s3994_s20  ;;  %s3999_s22 = sshll.u32 %s4111_s15, 4  ;;  %s4000_s22 = int_to_ptr.vmem [resolvable:$false] %s3999_s22 }
  0x2a   : > { %s4001_s21 = scalar_lea.vmem %s4000_s22, 256  ;;  %p4002_p11 = scmp.lt.s32.totalorder %s4250_s26, %s4000_s22 }
  0x2b   : > { %p3997_p4 = pnand %p3995_p2, %p3981_p3  ;;  %p4003_p5 = scmp.lt.s32.totalorder %s4001_s21, %s3994_s20 }
  0x2d   : > { %p3998_p12 = pneg %p3997_p4  ;;  %p4004_p8 = por %p4003_p5, %p4002_p11 }
  0x2f   : > { %p4005_p9 = pnand %p4004_p8, %p3998_p12 }
  0x31   : > { %4008 = shalt.err (!%p4005_p9)
}
  0x32   : > { %3864 = dma.hbm_to_vmem [thread:$0]  (!%p4246_p13), %s4240_s24, 128, %s4250_s26, %s268_s12  }
  0x33   : > { %p4803_p0 = scmp.lt.s32.totalorder %s4109_s30, 3  ;;  %p4804_p1 = scmp.ge.s32.totalorder %s4109_s30, 1 }
  0x34   : > { %s4806_s20 = sshll.u32 %s4109_s30, 7  ;;  %s4807_s22 = sshll.u32 %s4231_s19, 3 }
  0x35   : > { %p4284_p7 = pnand %p4804_p1, %p4803_p0  ;;  %s4293_s15 = scalar_lea.hbm %s4781_s1, %s4806_s20 }
  0x36   : > { %s289_s21 = scalar_lea.vmem [#allocation5], %s4807_s22  ;;  %s286_s24 = scalar_lea.sflag [#allocation6], %s4231_s19 }
  0x37   : > { %s4805_s13 = scalar_select %p4284_p7, 1, 0 }
  0x38   : > { %s296_s0 = sshll.u32 %s289_s21, 4  ;;  %s4009_s26 = scalar_lea.hbm %s4293_s15, 128  ;;  %s297_s0 = int_to_ptr.vmem [resolvable:$true] %s296_s0 }
  0x39   : > { %p4010_p11 = scmp.ne.s32.totalorder %s4293_s15, %s4009_s26  ;;  %s4014_s20 = scalar_lea.hbm %s4781_s1, 256 }
  0x3a   : > { %p4015_p2 = scmp.lt.u32.totalorder %s4293_s15, %s4781_s1  ;;  %p4016_p4 = scmp.lt.u32.totalorder %s4014_s20, %s4009_s26 }
  0x3b   : > { %p4012_p12 = pnand %p4010_p11, %p3981_p3  ;;  %p4018_p8 = scmp.lt.u32.totalorder %s4009_s26, %s4293_s15 }
  0x3c   : > { %p4017_p5 = por %p4016_p4, %p4015_p2 }
  0x3d   : > { %p4013_p10 = pneg %p4012_p12 }
  0x3e   : > { %p4019_p9 = por %p4018_p8, %p4017_p5 }
  0x40   : > { %p4020_p0 = pnand %p4019_p9, %p4013_p10 }
  0x42   : > { %4023 = shalt.err (!%p4020_p0)
}
  0x43   : > { %s4024_s19 = scalar_lea.vmem %s297_s0, 128  ;;  %s4112_s22 = smov [#allocation5]  }
  0x44   : > { %p4025_p1 = scmp.ne.s32.totalorder %s297_s0, %s4024_s19  ;;  %s4029_s14 = sshll.u32 %s4112_s22, 4  ;;  %s4030_s14 = int_to_ptr.vmem [resolvable:$false] %s4029_s14 }
  0x45   : > { %s4031_s21 = scalar_lea.vmem %s4030_s14, 256  ;;  %p4032_p6 = scmp.lt.s32.totalorder %s297_s0, %s4030_s14 }
  0x46   : > { %p4027_p11 = pnand %p4025_p1, %p3981_p3  ;;  %p4033_p7 = scmp.lt.s32.totalorder %s4031_s21, %s4024_s19 }
  0x48   : > { %p4028_p12 = pneg %p4027_p11  ;;  %p4034_p2 = por %p4033_p7, %p4032_p6 }
  0x4a   : > { %p4035_p4 = pnand %p4034_p2, %p4028_p12 }
  0x4c   : > { %4038 = shalt.err (!%p4035_p4)
}
  0x4d   : > { %3867 = dma.hbm_to_vmem [thread:$0]  (!%p4246_p13), %s4293_s15, 128, %s297_s0, %s286_s24  }
  0x4e   : > { %p4808_p10 = scmp.ne.s32.totalorder %s4805_s13, 0 }
  0x4f   : > { %s4320_s26 = sand.u32 (!%p4808_p10), 1, %s4101_s28   ;;  %p4809_p6 = scmp.ne.s32.totalorder (!%p4808_p10), %s4798_s16, 0 }
  0x50   : > { %305 = sbr.rel (%p4808_p10) target bundleno = 5901 (0x170d), region = 52  ;;  %s4323_s12 = sshll.u32 (!%p4808_p10), %s4320_s26, 3 }
  0x51   : > { %s308_s20 = scalar_lea.sflag (!%p4808_p10), [#allocation3], %s4320_s26  ;;  %s311_s23 = scalar_lea.vmem (!%p4808_p10), [#allocation2], %s4323_s12 }
  0x57   : > { %4084 = dma.done.wait (%p4809_p6), %s308_s20, 128  }
  0x58   : > { %4086 = vsyncadd (%p4809_p6), %s308_s20, 4294967168  ;;  %s317_s0 = scalar_lea.sflag [#allocation6], %s4320_s26  ;;  %s320_s10 = scalar_lea.vmem [#allocation5], %s4323_s12 }
  0x59   : > { %4088 = dma.done.wait (%p4809_p6), %s317_s0, 128  }
  0x5a   : > { %4090 = vsyncadd (%p4809_p6), %s317_s0, 4294967168  ;;  %vm365_vm0 = vcmask 261120   ;;  %v4337_v0 = vld [vmem:[%s311_s23] sm:$0xff]  ;;  %v4113_v8 = vmov 0.0   ;;  %vm4114_vm1 = vmmov 0   ;;  %v380_v12 = vlaneseq  ;;  %s4115_s21 = smov 104  }
  0x5b   : > { %v366_v1 = vsel %vm365_vm0, %v4337_v0, 0.0  ;;  %v3919_v7 = vld [vmem:[%s4782_s2] sm:$0xff]   ;;  %3703 = vmatprep.subr.bf16.mxu0 %v4113_v8  ;;  %3707 = vmatprep.mubr.msk.bf16.mxu0 %vm4114_vm1, %v4113_v8  ;;  %v3920_v9 = vld [vmem:[%s4782_s2 + $0x8] sm:$0xff]   ;;  %s4116_s20 = smov 120   ;;  %s4117_s23 = smov 112   ;;  %vm603_vm2 = vcmask 64512  }
  0x5c   : > { %367 = vadd.xlane.f32.xlu0 %v366_v1  ;;  %3704 = vmatpush3.bf16.msra.mxu0 %v3919_v7  ;;  %v4357_v14 = vshrl.u32 %v380_v12, 7  ;;  %v4365_v16 = vld [vmem:[%s4786_s6] sm:$0x3f]  ;;  %s4118_s0 = smov 96   ;;  %v359_v43 = vld [vmem:[%s320_s10] sm:$0xff]  ;;  %s4119_s10 = smov 64  }
  0x5d   : > { %3711 = vmatprep.subr.mxu1 %v4113_v8  ;;  %3705 = vmatprep.subr.bf16.mxu0 %v4113_v8  ;;  %v4380_v25 = vld [vmem:[%s4787_s7] sm:$0x3]  ;;  %v3560_v44 = vadd.f32 -1.0, %v359_v43  ;;  %s4122_s25 = smov 16   ;;  %s4794_s19 = smov 8   ;;  %vm1657_vm3 = vcmask 130048  }
  0x5e   : > { %3713 = vmatprep.mubr.msk.f32.mxu1 %vm4114_vm1, %v4113_v8  ;;  %v4360_v15 = vsub.s32 0, %v4357_v14  ;;  %v4368_v17 = vsub.s32 1, %v4357_v14  ;;  %s4793_s22 = smov 24   ;;  %vm1659_vm4 = vcmask 195584   ;;  %vm1857_vm5 = vcmask 523264   ;;  %p4812_p3 = scmp.ne.s32.totalorder %s4799_s17, 0 }
  0x5f   : > { %v4419_v45 = vmul.f32 1e+09, %v3560_v44  ;;  %s4126_s13 = smov [#allocation7]  }
  0x60   : > { %3706 = vmatpush3.bf16.msra.mxu0 %v3920_v9  ;;  %v383_v18 = vrot.slane %v4365_v16, %v4360_v15  ;;  %v388_v21 = vrot.slane %v4365_v16, %v4368_v17  ;;  %v4384_v26 = vrot.slane %v4380_v25, %v4360_v15 }
  0x61   : > { %3731 = vmatprep.subr.mxu0 %v4113_v8 }
  0xe9   : > { %v368_v2 = vpop.xlane.xlu0 %367 }
  0xea   : > { %v370_v3 = vmul.f32 0.03125, %v368_v2 }
  0xec   : > { %v371_v4 = vsub.f32 %v4337_v0, %v370_v3 }
  0xee   : > { %v372_v5 = vmul.f32 %v371_v4, %v371_v4 }
  0xf0   : > { %v373_v6 = vsel %vm365_vm0, %v372_v5, 0.0 }
  0xf1   : > { %374 = vadd.xlane.f32.xlu0 %v373_v6 }
 0x17e   : > { %v375_v10 = vpop.xlane.xlu0 %374 }
 0x17f   : > { %v376_v11 = vmul.f32 0.03125, %v375_v10 }
 0x181   : > { %v377_v13 = vadd.f32 1e-05, %v376_v11 }
 0x183   : > { %3939 = vrsqrt.f32 %v377_v13 }
 0x18d   : > { %v3940_v19 = vpop.eup %3939 }
 0x18e   : > { %v379_v20 = vmul.f32 %v3940_v19, %v371_v4 }
 0x190   : > { %v384_v22 = vmul.f32 %v383_v18, %v379_v20 }
 0x192   : > { %v389_v23 = vadd.f32 %v388_v21, %v384_v22 }
 0x194   : > { %v390_v24 = vpack.c.bf16 %v389_v23, %v389_v23 }
 0x196   : > { %3708 = vmatmul.mubr.msk.bf16.vlgmr.msra.gmra.mrb[0].mxu0 %vm365_vm0, %v390_v24 }
 0x197   : > { %3733 = vmatprep.mubr.msk.f32.mxu0 %vm4114_vm1, %v4113_v8 }
 0x269   : > { %v450_v27 = vpop.f32.mrb[0].mxu0 }
 0x26a   : > { %v4387_v28 = vadd.f32 %v450_v27, %v4384_v26  ;;  %v3709_v29 = vpop.f32.mrb[1].mxu0 }
 0x26b   : > { %v453_v30 = vpop.f32.mrb[2].mxu0 }
 0x26c   : > { %461 = vrot.lane.b32.xlu0 %v4387_v28, %s4115_s21  ;;  %457 = vrot.lane.b32.xlu1 %v4387_v28, %s4116_s20  ;;  %v3710_v31 = vpop.f32.mrb[3].mxu0 }
 0x270   : > { %459 = vrot.lane.b32.xlu1 %v4387_v28, %s4117_s23 }
 0x274   : > { %463 = vrot.lane.b32.xlu1 %v4387_v28, %s4118_s0 }
 0x2de   : > { %v458_v32 = vpop.permute.xlu1 %457  ;;  %v462_v34 = vpop.permute.xlu0 %461 }
 0x2df   : > { %465 = vrot.lane.b32.xlu1 %v458_v32, %s4118_s0 }
 0x2e2   : > { %v460_v33 = vpop.permute.xlu1 %459 }
 0x2e3   : > { %467 = vrot.lane.b32.xlu1 %v460_v33, %s4118_s0 }
 0x2e6   : > { %v464_v35 = vpop.permute.xlu1 %463 }
 0x2e7   : > { %469 = vrot.lane.b32.xlu1 %v462_v34, %s4118_s0 }
 0x310   : > { %475 = vxpose.xlu1.b32.start.end [1/1] (short) (narrow) %v464_v35, 8 }
 0x351   : > { %v466_v36 = vpop.permute.xlu1 %465 }
 0x352   : > { %507 = vxpose.xlu0.b32.start.end [1/1] (short) (narrow) %v466_v36, 8 }
 0x355   : > { %v468_v37 = vpop.permute.xlu1 %467 }
 0x356   : > { %539 = vxpose.xlu0.b32.start.end [1/1] (short) (narrow) %v468_v37, 8 }
 0x359   : > { %v470_v38 = vpop.permute.xlu1 %469 }
 0x35a   : > { %571 = vxpose.xlu0.b32.start.end [1/1] (short) (narrow) %v470_v38, 8 }
 0x390   : > { %v491_v39 = vpop.trf.xlu1 }
 0x391   : > { %3712 = vmatpush3.msra.mxu1 %v491_v39 }
 0x392   : > { %3714 = vmatmul.mubr.msk.f32.vlgmr.msra.gmra.mrb[0].mxu1 %vm603_vm2, %v4387_v28  ;;  %3716 = vmatprep.subr.mxu1 %v4113_v8 }
 0x393   : > { %3718 = vmatprep.mubr.msk.f32.mxu1 %vm4114_vm1, %v4113_v8 }
 0x3d2   : > { %v523_v40 = vpop.trf.xlu0 }
 0x3d3   : > { %3717 = vmatpush3.msra.mxu1 %v523_v40 }
 0x3d4   : > { %3719 = vmatmul.mubr.msk.f32.vlgmr.msra.gmra.mrb[2].mxu1 %vm603_vm2, %v458_v32  ;;  %3721 = vmatprep.subr.mxu1 %v4113_v8 }
 0x3d5   : > { %3723 = vmatprep.mubr.msk.f32.mxu1 %vm4114_vm1, %v4113_v8 }
 0x3d6   : > { %v555_v41 = vpop.trf.xlu0 }
 0x3d7   : > { %3722 = vmatpush3.msra.mxu1 %v555_v41 }
 0x3d8   : > { %3724 = vmatmul.mubr.msk.f32.vlgmr.msra.gmra.mrb[4].mxu1 %vm603_vm2, %v460_v33  ;;  %3726 = vmatprep.subr.mxu1 %v4113_v8 }
 0x3d9   : > { %3728 = vmatprep.mubr.msk.f32.mxu1 %vm4114_vm1, %v4113_v8 }
 0x3da   : > { %v587_v42 = vpop.trf.xlu0 }
 0x3db   : > { %3727 = vmatpush3.msra.mxu1 %v587_v42 }
 0x3dc   : > { %3729 = vmatmul.mubr.msk.f32.vlgmr.msra.gmra.mrb[6].mxu1 %vm603_vm2, %v462_v34  ;;  %3736 = vmatprep.subr.mxu1 %v4113_v8 }
 0x3dd   : > { %3738 = vmatprep.mubr.msk.f32.mxu1 %vm4114_vm1, %v4113_v8 }
 0x465   : > { %v672_v46 = vpop.f32.mrb[0].mxu1 }
 0x466   : > { %v673_v47 = vadd.f32 %v672_v46, %v4419_v45  ;;  %v3715_v48 = vpop.f32.mrb[1].mxu1 }
 0x468   : > { %v892_v49 = vsel %vm603_vm2, %v673_v47, -inf }
 0x469   : > { %893 = vmax.xlane.f32.xlu1 %v892_v49 }
 0x4a7   : > { %v744_v50 = vpop.f32.mrb[2].mxu1 }
 0x4a8   : > { %v745_v51 = vadd.f32 %v744_v50, %v4419_v45  ;;  %v3720_v52 = vpop.f32.mrb[3].mxu1 }
 0x4aa   : > { %v895_v53 = vsel %vm603_vm2, %v745_v51, -inf }
 0x4ab   : > { %v816_v54 = vpop.f32.mrb[4].mxu1  ;;  %896 = vmax.xlane.f32.xlu0 %v895_v53 }
 0x4ac   : > { %v817_v55 = vadd.f32 %v816_v54, %v4419_v45  ;;  %v3725_v56 = vpop.f32.mrb[5].mxu1 }
 0x4ad   : > { %v4120_v56 = vmov 1983009808  }
 0x4ae   : > { %v898_v57 = vsel %vm603_vm2, %v817_v55, -inf }
 0x4af   : > { %v888_v58 = vpop.f32.mrb[6].mxu1  ;;  %899 = vmax.xlane.f32.xlu1 %v898_v57  ;;  %v1511_v57 = vunpack.c.l.s4 %v4120_v56 }
 0x4b0   : > { %v889_v59 = vadd.f32 %v888_v58, %v4419_v45  ;;  %v3730_v60 = vpop.f32.mrb[7].mxu1  ;;  %v4121_v58 = vmov 1934713408  }
 0x4b2   : > { %v901_v61 = vsel %vm603_vm2, %v889_v59, -inf }
 0x4b3   : > { %902 = vmax.xlane.f32.xlu1 %v901_v61  ;;  %v1512_v61 = vunpack.c.0.s8 %v1511_v57  ;;  %v1668_v57 = vsub.s32 4, %v4357_v14 }
 0x4c1   : > { %938 = vrot.lane.b32.xlu0 %v458_v32, %s4119_s10 }
 0x4c4   : > { %936 = vrot.lane.b32.xlu1 %v4387_v28, %s4119_s10 }
 0x4c8   : > { %940 = vrot.lane.b32.xlu1 %v460_v33, %s4119_s10 }
 0x4cc   : > { %942 = vrot.lane.b32.xlu1 %v462_v34, %s4119_s10 }
 0x4f6   : > { %v894_v62 = vpop.xlane.xlu1 %893 }
 0x4f7   : > { %v904_v63 = vsub.f32 %v673_v47, %v894_v62 }
 0x4f9   : > { %v908_v1 = vmul.f32 1.442695, %v904_v63 }
 0x4fb   : > { %3941 = vpow2.f32 %v908_v1  ;;  %v4459_v1 = vsub.s32 %v1512_v61, %v4357_v14 }
 0x505   : > { %v3942_v2 = vpop.eup %3941 }
 0x506   : > { %v916_v3 = vsel %vm603_vm2, %v3942_v2, 0.0 }
 0x507   : > { %917 = vadd.xlane.f32.xlu0 %v916_v3 }
 0x538   : > { %v897_v4 = vpop.xlane.xlu0 %896 }
 0x539   : > { %v905_v5 = vsub.f32 %v745_v51, %v897_v4 }
 0x53b   : > { %v910_v6 = vmul.f32 1.442695, %v905_v5 }
 0x53c   : > { %v900_v7 = vpop.xlane.xlu1 %899  ;;  %v939_v27 = vpop.permute.xlu0 %938 }
 0x53d   : > { %3943 = vpow2.f32 %v910_v6  ;;  %v906_v9 = vsub.f32 %v817_v55, %v900_v7 }
 0x53f   : > { %v912_v10 = vmul.f32 1.442695, %v906_v9 }
 0x540   : > { %v903_v11 = vpop.xlane.xlu1 %902 }
 0x541   : > { %3945 = vpow2.f32 %v912_v10  ;;  %v907_v12 = vsub.f32 %v889_v59, %v903_v11  ;;  %v1543_v59 = vunpack.c.l.s4 %v4121_v58  ;;  %v1669_v58 = vrot.slane %v4365_v16, %v1668_v57 }
 0x543   : > { %v914_v13 = vmul.f32 1.442695, %v907_v12  ;;  %v1544_v63 = vunpack.c.0.s8 %v1543_v59 }
 0x544   : > { %v937_v24 = vpop.permute.xlu1 %936 }
 0x545   : > { %3947 = vpow2.f32 %v914_v13  ;;  %v4462_v7 = vsub.s32 %v1544_v63, %v4357_v14 }
 0x547   : > { %v3944_v18 = vpop.eup %3943 }
 0x548   : > { %v919_v19 = vsel %vm603_vm2, %v3944_v18, 0.0  ;;  %v941_v28 = vpop.permute.xlu1 %940 }
 0x549   : > { %920 = vadd.xlane.f32.xlu1 %v919_v19 }
 0x54b   : > { %v3946_v20 = vpop.eup %3945 }
 0x54c   : > { %v922_v21 = vsel %vm603_vm2, %v3946_v20, 0.0  ;;  %v943_v29 = vpop.permute.xlu1 %942 }
 0x54d   : > { %923 = vadd.xlane.f32.xlu0 %v922_v21  ;;  %v3921_v21 = vld [vmem:[%s4783_s3] sm:$0xff]  }
 0x54f   : > { %v3948_v22 = vpop.eup %3947 }
 0x550   : > { %v925_v23 = vsel %vm603_vm2, %v3948_v22, 0.0 }
 0x551   : > { %926 = vadd.xlane.f32.xlu0 %v925_v23 }
 0x57c   : > { %948 = vxpose.xlu1.b32.start.end [1/1] (short) (narrow) %v937_v24, 8 }
 0x57e   : > { %980 = vxpose.xlu0.b32.start.end [1/1] (short) (narrow) %v939_v27, 8 }
 0x582   : > { %1012 = vxpose.xlu0.b32.start.end [1/1] (short) (narrow) %v941_v28, 8 }
 0x586   : > { %1044 = vxpose.xlu0.b32.start.end [1/1] (short) (narrow) %v943_v29, 8 }
 0x594   : > { %v918_v30 = vpop.xlane.xlu0 %917 }
 0x595   : > { %3949 = vrcp.f32 %v918_v30 }
 0x59f   : > { %v3950_v31 = vpop.eup %3949 }
 0x5a0   : > { %v932_v32 = vmul.f32 %v3950_v31, %v3942_v2 }
 0x5a2   : > { %3732 = vmatpush3.xpose.msk.msra.mxu0 %vm603_vm2, %v932_v32  ;;  %v3922_v32 = vld [vmem:[%s4783_s3 + $0x8] sm:$0xff]  }
 0x5a3   : > { %3741 = vmatprep.subr.mxu0 %v4113_v8 }
 0x5d6   : > { %v921_v33 = vpop.xlane.xlu1 %920 }
 0x5d7   : > { %3951 = vrcp.f32 %v921_v33 }
 0x5da   : > { %v924_v36 = vpop.xlane.xlu0 %923 }
 0x5db   : > { %3953 = vrcp.f32 %v924_v36 }
 0x5de   : > { %v927_v37 = vpop.xlane.xlu0 %926 }
 0x5df   : > { %3955 = vrcp.f32 %v927_v37 }
 0x5e1   : > { %v3952_v34 = vpop.eup %3951 }
 0x5e2   : > { %v933_v35 = vmul.f32 %v3952_v34, %v3944_v18 }
 0x5e4   : > { %3737 = vmatpush3.xpose.msk.msra.mxu1 %vm603_vm2, %v933_v35 }
 0x5e5   : > { %3746 = vmatprep.subr.mxu1 %v4113_v8  ;;  %v3954_v38 = vpop.eup %3953 }
 0x5e6   : > { %v934_v40 = vmul.f32 %v3954_v38, %v3946_v20 }
 0x5e9   : > { %v3956_v39 = vpop.eup %3955 }
 0x5ea   : > { %v935_v42 = vmul.f32 %v3956_v39, %v3948_v22 }
 0x5fc   : > { %v964_v41 = vpop.trf.xlu1 }
 0x5fd   : > { %3734 = vmatmul.mubr.msk.f32.vlgmr.msra.gmra.mrb[4].mxu0 %vm603_vm2, %v964_v41 }
 0x5fe   : > { %3742 = vmatpush3.xpose.msk.msra.mxu0 %vm603_vm2, %v934_v40  ;;  %v996_v43 = vpop.trf.xlu0  ;;  %3743 = vmatprep.mubr.msk.f32.mxu0 %vm4114_vm1, %v4113_v8 }
 0x5ff   : > { %3739 = vmatmul.mubr.msk.f32.vlgmr.msra.gmra.mrb[8].mxu1 %vm603_vm2, %v996_v43  ;;  %3767 = vmatprep.subr.bf16.mxu0 %v4113_v8 }
 0x600   : > { %3747 = vmatpush3.xpose.msk.msra.mxu1 %vm603_vm2, %v935_v42  ;;  %3748 = vmatprep.mubr.msk.f32.mxu1 %vm4114_vm1, %v4113_v8 }
 0x601   : > { %3751 = vmatprep.subr.bf16.mxu1 %v4113_v8 }
 0x602   : > { %v1028_v44 = vpop.trf.xlu0 }
 0x603   : > { %3744 = vmatmul.mubr.msk.f32.vlgmr.msra.gmra.mrb[6].mxu0 %vm603_vm2, %v1028_v44 }
 0x604   : > { %3775 = vmatprep.mubr.msk.bf16.mxu0 %vm4114_vm1, %v4113_v8 }
 0x606   : > { %v1060_v46 = vpop.trf.xlu0 }
 0x607   : > { %3749 = vmatmul.mubr.msk.f32.vlgmr.msra.gmra.mrb[10].mxu1 %vm603_vm2, %v1060_v46 }
 0x608   : > { %3755 = vmatprep.mubr.msk.bf16.mxu1 %vm4114_vm1, %v4113_v8  ;;  %3752 = vmatpush3.bf16.msra.mxu1 %v3921_v21  ;;  %v1741_v21 = vsub.s32 2, %v4357_v14 }
 0x609   : > { %3753 = vmatprep.subr.bf16.mxu1 %v4113_v8 }
 0x60c   : > { %3754 = vmatpush3.bf16.msra.mxu1 %v3922_v32  ;;  %v3928_v32 = vld [vmem:[%s4785_s5 + $0x18] sm:$0xff]  }
 0x60d   : > { %3759 = vmatprep.subr.bf16.mxu1 %v4113_v8 }
 0x6d0   : > { %v1148_v47 = vpop.f32.mrb[4].mxu0 }
 0x6d1   : > { %1380 = vxpose.xlu1.b32.start.end [1/1] (short) (narrow) %v1148_v47, 8  ;;  %v3735_v48 = vpop.f32.mrb[5].mxu0 }
 0x6d2   : > { %v1224_v49 = vpop.f32.mrb[8].mxu1 }
 0x6d3   : > { %1412 = vxpose.xlu0.b32.start.end [1/1] (short) (narrow) %v1224_v49, 8  ;;  %v3740_v50 = vpop.f32.mrb[9].mxu1 }
 0x6d6   : > { %v1300_v51 = vpop.f32.mrb[6].mxu0 }
 0x6d7   : > { %1444 = vxpose.xlu1.b32.start.end [1/1] (short) (narrow) %v1300_v51, 8  ;;  %v3745_v52 = vpop.f32.mrb[7].mxu0 }
 0x6da   : > { %v1376_v53 = vpop.f32.mrb[10].mxu1 }
 0x6db   : > { %1476 = vxpose.xlu0.b32.start.end [1/1] (short) (narrow) %v1376_v53, 8  ;;  %v3750_v54 = vpop.f32.mrb[11].mxu1 }
 0x751   : > { %v1396_v55 = vpop.trf.xlu1 }
 0x753   : > { %v1428_v60 = vpop.trf.xlu0 }
 0x757   : > { %v1460_v62 = vpop.trf.xlu1 }
 0x758   : > { %v1508_v2 = vcombine.low %v1396_v55, %v1460_v62  ;;  %v1509_v3 = vcombine.high %v1396_v55, %v1460_v62 }
 0x75a   : > { %v1516_v9 = vrot.slane %v1508_v2, %v4459_v1  ;;  %v1523_v10 = vrot.slane %v1509_v3, %v4459_v1 }
 0x75b   : > { %v1492_v4 = vpop.trf.xlu0 }
 0x75c   : > { %v1524_v5 = vcombine.low %v1428_v60, %v1492_v4  ;;  %v1525_v6 = vcombine.high %v1428_v60, %v1492_v4 }
 0x75e   : > { %v1532_v11 = vrot.slane %v1524_v5, %v4459_v1  ;;  %v1539_v12 = vrot.slane %v1525_v6, %v4459_v1 }
 0x760   : > { %v1540_v13 = vcombine.low %v1516_v9, %v1532_v11  ;;  %v1541_v18 = vcombine.high %v1516_v9, %v1532_v11  ;;  %v1556_v19 = vcombine.low %v1523_v10, %v1539_v12  ;;  %v1557_v20 = vcombine.high %v1523_v10, %v1539_v12  ;;  %v3923_v11 = vld [vmem:[%s4784_s4] sm:$0xff]  }
 0x761   : > { %v1757_v12 = vrot.slane %v4380_v25, %v4368_v17 }
 0x762   : > { %v1548_v22 = vrot.slane %v1540_v13, %v4462_v7  ;;  %v1555_v23 = vrot.slane %v1541_v18, %v4462_v7  ;;  %v1564_v24 = vrot.slane %v1556_v19, %v4462_v7  ;;  %v1571_v27 = vrot.slane %v1557_v20, %v4462_v7  ;;  %v3925_v13 = vld [vmem:[%s4785_s5] sm:$0xff]   ;;  %v3926_v18 = vld [vmem:[%s4785_s5 + $0x8] sm:$0xff]  }
 0x763   : > { %3768 = vmatpush3.bf16.msra.mxu0 %v3925_v13 }
 0x764   : > { %v1576_v28 = vcombine.low %v1548_v22, %v1555_v23  ;;  %v3576_v29 = vcombine.high %v1548_v22, %v1555_v23  ;;  %v1592_v30 = vcombine.low %v1564_v24, %v1571_v27  ;;  %v3577_v31 = vcombine.high %v1564_v24, %v1571_v27  ;;  %3769 = vmatprep.subr.bf16.mxu0 %v4113_v8 }
 0x765   : > { %v1742_v22 = vrot.slane %v4365_v16, %v1741_v21 }
 0x766   : > { %v1583_v33 = vrot.slane %v1576_v28, %v4459_v1  ;;  %v1591_v34 = vrot.slane %v3576_v29, %v4459_v1  ;;  %v1599_v35 = vrot.slane %v1592_v30, %v4459_v1  ;;  %v1607_v36 = vrot.slane %v3577_v31, %v4459_v1  ;;  %v3927_v31 = vld [vmem:[%s4785_s5 + $0x10] sm:$0xff]  }
 0x767   : > { %3770 = vmatpush3.bf16.msra.mxu0 %v3926_v18 }
 0x768   : > { %v1609_v37 = vcombine.high %v1583_v33, %v1591_v34  ;;  %v1625_v38 = vcombine.high %v1599_v35, %v1607_v36  ;;  %v1608_v39 = vcombine.low %v1583_v33, %v1591_v34  ;;  %v1624_v40 = vcombine.low %v1599_v35, %v1607_v36  ;;  %3771 = vmatprep.subr.bf16.mxu0 %v4113_v8 }
 0x76a   : > { %v1623_v41 = vrot.slane %v1609_v37, %v4462_v7  ;;  %v1639_v42 = vrot.slane %v1625_v38, %v4462_v7  ;;  %v1616_v43 = vrot.slane %v1608_v39, %v4462_v7  ;;  %v1632_v44 = vrot.slane %v1624_v40, %v4462_v7 }
 0x76b   : > { %3772 = vmatpush3.bf16.msra.mxu0 %v3927_v31 }
 0x76c   : > { %v1642_v46 = vcombine.low %v1623_v41, %v1639_v42  ;;  %v1641_v47 = vcombine.high %v1616_v43, %v1632_v44  ;;  %v1640_v48 = vcombine.low %v1616_v43, %v1632_v44  ;;  %v1643_v49 = vcombine.high %v1623_v41, %v1639_v42  ;;  %3773 = vmatprep.subr.bf16.mxu0 %v4113_v8 }
 0x76d   : > { %v1831_v43 = vsub.s32 5, %v4357_v14 }
 0x76e   : > { %1649 = vrot.lane.b32.xlu0 %v1642_v46, %s4122_s25  ;;  %1645 = vrot.lane.b32.xlu1 %v1641_v47, %s4794_s19  ;;  %s4125_s19 = smov 32  }
 0x76f   : > { %3774 = vmatpush3.bf16.msra.mxu0 %v3928_v32  ;;  %v1832_v44 = vrot.slane %v4365_v16, %v1831_v43 }
 0x770   : > { %3797 = vmatprep.subr.mxu0 %v4113_v8 }
 0x772   : > { %1653 = vrot.lane.b32.xlu1 %v1643_v49, %s4793_s22  ;;  %s4811_s22 = smov 24  }
 0x7e0   : > { %v1646_v50 = vpop.permute.xlu1 %1645  ;;  %v1650_v51 = vpop.permute.xlu0 %1649 }
 0x7e1   : > { %v1656_v52 = vsel %vm603_vm2, %v1640_v48, %v1646_v50 }
 0x7e2   : > { %v1658_v54 = vsel %vm1657_vm3, %v1656_v52, %v1650_v51 }
 0x7e4   : > { %v1654_v53 = vpop.permute.xlu1 %1653 }
 0x7e5   : > { %v1660_v55 = vsel %vm1659_vm4, %v1658_v54, %v1654_v53 }
 0x7e6   : > { %v1661_v56 = vpack.c.bf16 %v1660_v55, %v1660_v55 }
 0x7e8   : > { %3756 = vmatmul.mubr.msk.bf16.vlgmr.msra.gmra.mrb[12].mxu1 %vm365_vm0, %v1661_v56 }
 0x7e9   : > { %3763 = vmatprep.mubr.msk.bf16.mxu1 %vm4114_vm1, %v4113_v8  ;;  %3760 = vmatpush3.bf16.msra.mxu1 %v3923_v11  ;;  %v4586_v11 = vld [vmem:[%s4787_s7 + $0x2] sm:$0x3] }
 0x7ea   : > { %3761 = vmatprep.subr.bf16.mxu1 %v4113_v8 }
 0x8bb   : > { %v1719_v59 = vpop.f32.mrb[12].mxu1 }
 0x8bc   : > { %v1720_v60 = vadd.f32 %v1719_v59, %v1669_v58  ;;  %v3757_v61 = vpop.f32.mrb[13].mxu1  ;;  %v3930_v59 = vld [vmem:[%s4782_s2 + $0x18] sm:$0xff]  }
 0x8bd   : > { %v1722_v62 = vpop.f32.mrb[14].mxu1 }
 0x8be   : > { %v4502_v63 = vadd.f32 %v1720_v60, %v4337_v0  ;;  %v3758_v2 = vpop.f32.mrb[15].mxu1  ;;  %v3924_v0 = vld [vmem:[%s4784_s4 + $0x8] sm:$0xff]  }
 0x8bf   : > { %3762 = vmatpush3.bf16.msra.mxu1 %v3924_v0  ;;  %v4590_v0 = vrot.slane %v4586_v11, %v4360_v15 }
 0x8c0   : > { %v1726_v3 = vsel %vm365_vm0, %v4502_v63, 0.0  ;;  %3779 = vmatprep.subr.bf16.mxu1 %v4113_v8 }
 0x8c1   : > { %1727 = vadd.xlane.f32.xlu1 %v1726_v3 }
 0x8d2   : > { %1770 = vrot.lane.b32.xlu1 %v4384_v26, %s4125_s19  ;;  %v1746_v26 = vsub.s32 3, %v4357_v14 }
 0x8d4   : > { %v1747_v27 = vrot.slane %v4365_v16, %v1746_v26  ;;  %v3929_v16 = vld [vmem:[%s4782_s2 + $0x10] sm:$0xff]  }
 0x94e   : > { %v1728_v4 = vpop.xlane.xlu1 %1727 }
 0x94f   : > { %v1729_v5 = vmul.f32 0.03125, %v1728_v4 }
 0x951   : > { %v1730_v6 = vsub.f32 %v4502_v63, %v1729_v5 }
 0x952   : > { %v1771_v34 = vpop.permute.xlu1 %1770 }
 0x953   : > { %v1731_v9 = vmul.f32 %v1730_v6, %v1730_v6 }
 0x955   : > { %v1732_v10 = vsel %vm365_vm0, %v1731_v9, 0.0 }
 0x956   : > { %1733 = vadd.xlane.f32.xlu0 %v1732_v10 }
 0x96c   : > { %1772 = vrot.lane.b32.xlu0 %v1757_v12, %s4125_s19 }
 0x9e3   : > { %v1734_v25 = vpop.xlane.xlu0 %1733 }
 0x9e4   : > { %v1735_v19 = vmul.f32 0.03125, %v1734_v25 }
 0x9e6   : > { %v1736_v20 = vadd.f32 1e-05, %v1735_v19 }
 0x9e7   : > { %v1773_v33 = vpop.permute.xlu0 %1772 }
 0x9e8   : > { %3957 = vrsqrt.f32 %v1736_v20  ;;  %v1774_v35 = vsel %vm365_vm0, %v1771_v34, %v1773_v33 }
 0x9f2   : > { %v3958_v23 = vpop.eup %3957 }
 0x9f3   : > { %v1738_v24 = vmul.f32 %v3958_v23, %v1730_v6 }
 0x9f5   : > { %v1743_v28 = vmul.f32 %v1742_v22, %v1738_v24 }
 0x9f7   : > { %v1748_v29 = vadd.f32 %v1747_v27, %v1743_v28 }
 0x9f9   : > { %v1749_v30 = vpack.c.bf16 %v1748_v29, %v1748_v29 }
 0x9fb   : > { %3764 = vmatmul.mubr.msk.bf16.vlgmr.msra.gmra.mrb[16].mxu1 %vm365_vm0, %v1749_v30 }
 0x9fc   : > { %3783 = vmatprep.mubr.msk.bf16.mxu1 %vm4114_vm1, %v4113_v8  ;;  %3780 = vmatpush3.bf16.msra.mxu1 %v3929_v16 }
 0x9fd   : > { %3781 = vmatprep.subr.bf16.mxu1 %v4113_v8 }
 0xa00   : > { %3782 = vmatpush3.bf16.msra.mxu1 %v3930_v59 }
 0xa01   : > { %3787 = vmatprep.subr.mxu1 %v4113_v8 }
 0xace   : > { %v1813_v36 = vpop.f32.mrb[16].mxu1 }
 0xacf   : > { %v1814_v37 = vadd.f32 %v1813_v36, %v1774_v35  ;;  %v3765_v38 = vpop.f32.mrb[17].mxu1 }
 0xad0   : > { %v1816_v39 = vpop.f32.mrb[18].mxu1 }
 0xad1   : > { %v1819_v40 = vmax.f32 %v1814_v37, 0.0  ;;  %v3766_v41 = vpop.f32.mrb[19].mxu1 }
 0xad3   : > { %v1820_v42 = vpack.c.bf16 %v1819_v40, %v1819_v40 }
 0xad5   : > { %3776 = vmatmul.mubr.msk.bf16.vlgmr.msra.gmra.mrb[8].mxu0 %vm1857_vm5, %v1820_v42 }
 0xad6   : > { %3799 = vmatprep.mubr.msk.f32.mxu0 %vm4114_vm1, %v4113_v8 }
 0xba8   : > { %v1895_v46 = vpop.f32.mrb[8].mxu0 }
 0xba9   : > { %v1896_v47 = vadd.f32 %v1895_v46, %v1832_v44  ;;  %v3777_v48 = vpop.f32.mrb[9].mxu0 }
 0xbaa   : > { %v1898_v49 = vpop.f32.mrb[10].mxu0 }
 0xbab   : > { %v4557_v50 = vadd.f32 %v1896_v47, %v4502_v63  ;;  %v3778_v51 = vpop.f32.mrb[11].mxu0  ;;  %v4574_v63 = vld [vmem:[%s4786_s6 + $0x8] sm:$0x3f] }
 0xbac   : > { %v1922_v2 = vrot.slane %v4574_v63, %v4360_v15  ;;  %v1927_v5 = vrot.slane %v4574_v63, %v4368_v17 }
 0xbad   : > { %v1906_v52 = vsel %vm365_vm0, %v4557_v50, 0.0 }
 0xbae   : > { %1907 = vadd.xlane.f32.xlu1 %v1906_v52 }
 0xc3b   : > { %v1908_v53 = vpop.xlane.xlu1 %1907 }
 0xc3c   : > { %v1909_v54 = vmul.f32 0.03125, %v1908_v53 }
 0xc3e   : > { %v1910_v55 = vsub.f32 %v4557_v50, %v1909_v54 }
 0xc40   : > { %v1911_v56 = vmul.f32 %v1910_v55, %v1910_v55 }
 0xc42   : > { %v1912_v58 = vsel %vm365_vm0, %v1911_v56, 0.0 }
 0xc43   : > { %1913 = vadd.xlane.f32.xlu0 %v1912_v58 }
 0xcd0   : > { %v1914_v60 = vpop.xlane.xlu0 %1913 }
 0xcd1   : > { %v1915_v61 = vmul.f32 0.03125, %v1914_v60 }
 0xcd3   : > { %v1916_v62 = vadd.f32 1e-05, %v1915_v61 }
 0xcd5   : > { %3959 = vrsqrt.f32 %v1916_v62 }
 0xcdf   : > { %v3960_v3 = vpop.eup %3959 }
 0xce0   : > { %v1918_v4 = vmul.f32 %v3960_v3, %v1910_v55 }
 0xce2   : > { %v1923_v6 = vmul.f32 %v1922_v2, %v1918_v4 }
 0xce4   : > { %v1928_v9 = vadd.f32 %v1927_v5, %v1923_v6 }
 0xce6   : > { %v1929_v10 = vpack.c.bf16 %v1928_v9, %v1928_v9 }
 0xce8   : > { %3784 = vmatmul.mubr.msk.bf16.vlgmr.msra.gmra.mrb[20].mxu1 %vm365_vm0, %v1929_v10 }
 0xce9   : > { %3789 = vmatprep.mubr.msk.f32.mxu1 %vm4114_vm1, %v4113_v8 }
 0xdbb   : > { %v1990_v12 = vpop.f32.mrb[20].mxu1 }
 0xdbc   : > { %v1991_v13 = vadd.f32 %v1990_v12, %v4590_v0  ;;  %v3785_v18 = vpop.f32.mrb[21].mxu1 }
 0xdbd   : > { %v1993_v25 = vpop.f32.mrb[22].mxu1 }
 0xdbe   : > { %1999 = vrot.lane.b32.xlu0 %v1991_v13, %s4117_s23  ;;  %1997 = vrot.lane.b32.xlu1 %v1991_v13, %s4116_s20  ;;  %v3786_v19 = vpop.f32.mrb[23].mxu1 }
 0xdc2   : > { %2001 = vrot.lane.b32.xlu1 %v1991_v13, %s4115_s21  ;;  %s4043_s21 = sshll.u32 %s4126_s13, 4  ;;  %s4044_s21 = int_to_ptr.vmem [resolvable:$false] %s4043_s21 }
 0xdc3   : > { %s4045_s20 = scalar_lea.vmem %s4044_s21, 256 }
 0xdc6   : > { %2003 = vrot.lane.b32.xlu1 %v1991_v13, %s4118_s0 }
 0xe30   : > { %v2000_v20 = vpop.permute.xlu0 %1999  ;;  %v1998_v22 = vpop.permute.xlu1 %1997 }
 0xe31   : > { %2007 = vrot.lane.b32.xlu0 %v2000_v20, %s4118_s0  ;;  %2005 = vrot.lane.b32.xlu1 %v1998_v22, %s4118_s0 }
 0xe34   : > { %v2002_v15 = vpop.permute.xlu1 %2001 }
 0xe35   : > { %2009 = vrot.lane.b32.xlu1 %v2002_v15, %s4118_s0 }
 0xe38   : > { %v2004_v23 = vpop.permute.xlu1 %2003 }
 0xe4f   : > { %2015 = vxpose.xlu0.b32.start.end [1/1] (short) (narrow) %v2004_v23, 8 }
 0xea3   : > { %v2008_v24 = vpop.permute.xlu0 %2007  ;;  %v2006_v27 = vpop.permute.xlu1 %2005 }
 0xea4   : > { %2079 = vxpose.xlu0.b32.start.end [1/1] (short) (narrow) %v2008_v24, 8  ;;  %2047 = vxpose.xlu1.b32.start.end [1/1] (short) (narrow) %v2006_v27, 8 }
 0xea7   : > { %v2010_v28 = vpop.permute.xlu1 %2009 }
 0xea8   : > { %2111 = vxpose.xlu0.b32.start.end [1/1] (short) (narrow) %v2010_v28, 8 }
 0xecf   : > { %v2031_v29 = vpop.trf.xlu0 }
 0xed0   : > { %3788 = vmatpush3.msra.mxu1 %v2031_v29 }
 0xed1   : > { %3790 = vmatmul.mubr.msk.f32.vlgmr.msra.gmra.mrb[24].mxu1 %vm603_vm2, %v1991_v13  ;;  %3792 = vmatprep.subr.mxu1 %v4113_v8 }
 0xed2   : > { %3794 = vmatprep.mubr.msk.f32.mxu1 %vm4114_vm1, %v4113_v8 }
 0xf24   : > { %v2095_v30 = vpop.trf.xlu0  ;;  %v2063_v31 = vpop.trf.xlu1 }
 0xf25   : > { %3793 = vmatpush3.msra.mxu1 %v2063_v31  ;;  %3798 = vmatpush3.msra.mxu0 %v2095_v30 }
 0xf26   : > { %3795 = vmatmul.mubr.msk.f32.vlgmr.msra.gmra.mrb[26].mxu1 %vm603_vm2, %v1998_v22  ;;  %3800 = vmatmul.mubr.msk.f32.vlgmr.msra.gmra.mrb[12].mxu0 %vm603_vm2, %v2000_v20 }
 0xf27   : > { %3802 = vmatprep.subr.mxu1 %v4113_v8  ;;  %3804 = vmatprep.mubr.msk.f32.mxu1 %vm4114_vm1, %v4113_v8 }
 0xf28   : > { %v2127_v32 = vpop.trf.xlu0  ;;  %3807 = vmatprep.subr.mxu0 %v4113_v8  ;;  %3809 = vmatprep.mubr.msk.f32.mxu0 %vm4114_vm1, %v4113_v8 }
 0xf29   : > { %3803 = vmatpush3.msra.mxu1 %v2127_v32 }
 0xf2a   : > { %3805 = vmatmul.mubr.msk.f32.vlgmr.msra.gmra.mrb[28].mxu1 %vm603_vm2, %v2002_v15  ;;  %3812 = vmatprep.subr.mxu1 %v4113_v8 }
 0xf2b   : > { %3814 = vmatprep.mubr.msk.f32.mxu1 %vm4114_vm1, %v4113_v8 }
 0xfa4   : > { %v2211_v33 = vpop.f32.mrb[24].mxu1 }
 0xfa5   : > { %v2212_v34 = vadd.f32 %v2211_v33, %v4419_v45  ;;  %v3791_v35 = vpop.f32.mrb[25].mxu1 }
 0xfa7   : > { %v2431_v36 = vsel %vm603_vm2, %v2212_v34, -inf }
 0xfa8   : > { %2432 = vmax.xlane.f32.xlu0 %v2431_v36 }
 0xff9   : > { %v2283_v37 = vpop.f32.mrb[26].mxu1  ;;  %v2355_v38 = vpop.f32.mrb[12].mxu0 }
 0xffa   : > { %v2284_v39 = vadd.f32 %v2283_v37, %v4419_v45  ;;  %v3796_v40 = vpop.f32.mrb[27].mxu1  ;;  %v3801_v41 = vpop.f32.mrb[13].mxu0  ;;  %v2356_v42 = vadd.f32 %v2355_v38, %v4419_v45 }
 0xffc   : > { %v2434_v44 = vsel %vm603_vm2, %v2284_v39, -inf  ;;  %v2437_v51 = vsel %vm603_vm2, %v2356_v42, -inf }
 0xffd   : > { %2435 = vmax.xlane.f32.xlu1 %v2434_v44  ;;  %v2427_v46 = vpop.f32.mrb[28].mxu1 }
 0xffe   : > { %v2428_v47 = vadd.f32 %v2427_v46, %v4419_v45  ;;  %v3806_v48 = vpop.f32.mrb[29].mxu1 }
0x1000   : > { %v2440_v49 = vsel %vm603_vm2, %v2428_v47, -inf }
0x1001   : > { %2441 = vmax.xlane.f32.xlu0 %v2440_v49  ;;  %2438 = vmax.xlane.f32.xlu1 %v2437_v51 }
0x1012   : > { %2475 = vrot.lane.b32.xlu1 %v1991_v13, %s4119_s10 }
0x1016   : > { %2479 = vrot.lane.b32.xlu1 %v2000_v20, %s4119_s10 }
0x1017   : > { %2477 = vrot.lane.b32.xlu0 %v1998_v22, %s4119_s10 }
0x101a   : > { %2481 = vrot.lane.b32.xlu1 %v2002_v15, %s4119_s10  ;;  %s4810_s10 = smov 8  }
0x1035   : > { %v2433_v52 = vpop.xlane.xlu0 %2432 }
0x1036   : > { %v2443_v53 = vsub.f32 %v2212_v34, %v2433_v52 }
0x1038   : > { %v2447_v54 = vmul.f32 1.442695, %v2443_v53 }
0x103a   : > { %3961 = vpow2.f32 %v2447_v54 }
0x1044   : > { %v3962_v45 = vpop.eup %3961 }
0x1045   : > { %v2455_v55 = vsel %vm603_vm2, %v3962_v45, 0.0 }
0x1046   : > { %2456 = vadd.xlane.f32.xlu0 %v2455_v55 }
0x108a   : > { %v2436_v56 = vpop.xlane.xlu1 %2435 }
0x108b   : > { %v2444_v58 = vsub.f32 %v2284_v39, %v2436_v56 }
0x108d   : > { %v2449_v16 = vmul.f32 1.442695, %v2444_v58 }
0x108e   : > { %v2442_v59 = vpop.xlane.xlu0 %2441  ;;  %v2439_v60 = vpop.xlane.xlu1 %2438 }
0x108f   : > { %3963 = vpow2.f32 %v2449_v16  ;;  %v2446_v61 = vsub.f32 %v2428_v47, %v2442_v59  ;;  %v2445_v62 = vsub.f32 %v2356_v42, %v2439_v60 }
0x1091   : > { %v2451_v2 = vmul.f32 1.442695, %v2445_v62  ;;  %v2453_v3 = vmul.f32 1.442695, %v2446_v61 }
0x1092   : > { %v2476_v13 = vpop.permute.xlu1 %2475  ;;  %v2478_v18 = vpop.permute.xlu0 %2477 }
0x1093   : > { %3965 = vpow2.f32 %v2451_v2 }
0x1094   : > { %3967 = vpow2.f32 %v2453_v3  ;;  %v3931_v3 = vld [vmem:[%s4783_s3 + $0x10] sm:$0xff]  }
0x1096   : > { %v2480_v25 = vpop.permute.xlu1 %2479 }
0x1099   : > { %v3964_v4 = vpop.eup %3963 }
0x109a   : > { %v2458_v5 = vsel %vm603_vm2, %v3964_v4, 0.0  ;;  %v2482_v20 = vpop.permute.xlu1 %2481 }
0x109b   : > { %2459 = vadd.xlane.f32.xlu1 %v2458_v5 }
0x109d   : > { %v3966_v6 = vpop.eup %3965 }
0x109e   : > { %v2461_v9 = vsel %vm603_vm2, %v3966_v6, 0.0  ;;  %v3968_v10 = vpop.eup %3967 }
0x109f   : > { %2462 = vadd.xlane.f32.xlu0 %v2461_v9  ;;  %v2464_v12 = vsel %vm603_vm2, %v3968_v10, 0.0 }
0x10a3   : > { %2465 = vadd.xlane.f32.xlu0 %v2464_v12 }
0x10ce   : > { %2487 = vxpose.xlu1.b32.start.end [1/1] (short) (narrow) %v2476_v13, 8 }
0x10d0   : > { %2519 = vxpose.xlu0.b32.start.end [1/1] (short) (narrow) %v2478_v18, 8 }
0x10d3   : > { %v2457_v19 = vpop.xlane.xlu0 %2456 }
0x10d4   : > { %3969 = vrcp.f32 %v2457_v19  ;;  %2551 = vxpose.xlu0.b32.start.end [1/1] (short) (narrow) %v2480_v25, 8  ;;  %v3932_v25 = vld [vmem:[%s4783_s3 + $0x18] sm:$0xff]  }
0x10d8   : > { %2583 = vxpose.xlu0.b32.start.end [1/1] (short) (narrow) %v2482_v20, 8 }
0x10de   : > { %v3970_v22 = vpop.eup %3969 }
0x10df   : > { %v2471_v15 = vmul.f32 %v3970_v22, %v3962_v45 }
0x10e1   : > { %3808 = vmatpush3.xpose.msk.msra.mxu0 %vm603_vm2, %v2471_v15 }
0x10e2   : > { %3817 = vmatprep.subr.mxu0 %v4113_v8 }
0x1128   : > { %v2460_v23 = vpop.xlane.xlu1 %2459 }
0x1129   : > { %3971 = vrcp.f32 %v2460_v23 }
0x112c   : > { %v2463_v28 = vpop.xlane.xlu0 %2462 }
0x112d   : > { %3973 = vrcp.f32 %v2463_v28 }
0x1130   : > { %v2466_v29 = vpop.xlane.xlu0 %2465 }
0x1131   : > { %3975 = vrcp.f32 %v2466_v29 }
0x1133   : > { %v3972_v24 = vpop.eup %3971 }
0x1134   : > { %v2472_v27 = vmul.f32 %v3972_v24, %v3964_v4 }
0x1136   : > { %3813 = vmatpush3.xpose.msk.msra.mxu1 %vm603_vm2, %v2472_v27 }
0x1137   : > { %3822 = vmatprep.subr.mxu1 %v4113_v8  ;;  %v3974_v30 = vpop.eup %3973 }
0x1138   : > { %v2473_v32 = vmul.f32 %v3974_v30, %v3966_v6 }
0x113b   : > { %v3976_v31 = vpop.eup %3975 }
0x113c   : > { %v2474_v34 = vmul.f32 %v3976_v31, %v3968_v10 }
0x114e   : > { %v2503_v33 = vpop.trf.xlu1 }
0x114f   : > { %3810 = vmatmul.mubr.msk.f32.vlgmr.msra.gmra.mrb[14].mxu0 %vm603_vm2, %v2503_v33 }
0x1150   : > { %3818 = vmatpush3.xpose.msk.msra.mxu0 %vm603_vm2, %v2473_v32  ;;  %3819 = vmatprep.mubr.msk.f32.mxu0 %vm4114_vm1, %v4113_v8  ;;  %v2535_v35 = vpop.trf.xlu0 }
0x1151   : > { %3827 = vmatprep.subr.bf16.mxu0 %v4113_v8  ;;  %3815 = vmatmul.mubr.msk.f32.vlgmr.msra.gmra.mrb[30].mxu1 %vm603_vm2, %v2535_v35 }
0x1152   : > { %3823 = vmatpush3.xpose.msk.msra.mxu1 %vm603_vm2, %v2474_v34  ;;  %3824 = vmatprep.mubr.msk.f32.mxu1 %vm4114_vm1, %v4113_v8 }
0x1153   : > { %3835 = vmatprep.subr.bf16.mxu1 %v4113_v8 }
0x1154   : > { %v2567_v36 = vpop.trf.xlu0 }
0x1155   : > { %3820 = vmatmul.mubr.msk.f32.vlgmr.msra.gmra.mrb[16].mxu0 %vm603_vm2, %v2567_v36 }
0x1156   : > { %3831 = vmatprep.mubr.msk.bf16.mxu0 %vm4114_vm1, %v4113_v8  ;;  %3828 = vmatpush3.bf16.msra.mxu0 %v3931_v3 }
0x1157   : > { %3829 = vmatprep.subr.bf16.mxu0 %v4113_v8 }
0x1158   : > { %v2599_v37 = vpop.trf.xlu0 }
0x1159   : > { %3825 = vmatmul.mubr.msk.f32.vlgmr.msra.gmra.mrb[32].mxu1 %vm603_vm2, %v2599_v37 }
0x115a   : > { %3839 = vmatprep.mubr.msk.bf16.mxu1 %vm4114_vm1, %v4113_v8  ;;  %3830 = vmatpush3.bf16.msra.mxu0 %v3932_v25 }
0x115b   : > { %3843 = vmatprep.subr.bf16.mxu0 %v4113_v8 }
0x1222   : > { %v2687_v38 = vpop.f32.mrb[14].mxu0 }
0x1223   : > { %2919 = vxpose.xlu1.b32.start.end [1/1] (short) (narrow) %v2687_v38, 8  ;;  %v3811_v39 = vpop.f32.mrb[15].mxu0 }
0x1224   : > { %v2763_v40 = vpop.f32.mrb[30].mxu1 }
0x1225   : > { %v3816_v41 = vpop.f32.mrb[31].mxu1  ;;  %2951 = vxpose.xlu0.b32.start.end [1/1] (short) (narrow) %v2763_v40, 8 }
0x1228   : > { %v2839_v42 = vpop.f32.mrb[16].mxu0 }
0x1229   : > { %v3821_v44 = vpop.f32.mrb[17].mxu0  ;;  %2983 = vxpose.xlu1.b32.start.end [1/1] (short) (narrow) %v2839_v42, 8  ;;  %v3207_v42 = vrot.slane %v4574_v63, %v1668_v57  ;;  %v3933_v57 = vld [vmem:[%s4784_s4 + $0x10] sm:$0xff]  }
0x122a   : > { %3836 = vmatpush3.bf16.msra.mxu1 %v3933_v57 }
0x122b   : > { %3837 = vmatprep.subr.bf16.mxu1 %v4113_v8 }
0x122c   : > { %v2915_v46 = vpop.f32.mrb[32].mxu1 }
0x122d   : > { %3015 = vxpose.xlu0.b32.start.end [1/1] (short) (narrow) %v2915_v46, 8  ;;  %v3826_v47 = vpop.f32.mrb[33].mxu1 }
0x12a3   : > { %v2935_v48 = vpop.trf.xlu1 }
0x12a5   : > { %v2967_v49 = vpop.trf.xlu0 }
0x12a9   : > { %v2999_v51 = vpop.trf.xlu1 }
0x12aa   : > { %v3047_v52 = vcombine.low %v2935_v48, %v2999_v51  ;;  %v3048_v53 = vcombine.high %v2935_v48, %v2999_v51 }
0x12ac   : > { %v3055_v56 = vrot.slane %v3047_v52, %v4459_v1  ;;  %v3062_v58 = vrot.slane %v3048_v53, %v4459_v1 }
0x12ad   : > { %v3031_v54 = vpop.trf.xlu0 }
0x12ae   : > { %v3063_v45 = vcombine.low %v2967_v49, %v3031_v54  ;;  %v3064_v55 = vcombine.high %v2967_v49, %v3031_v54 }
0x12b0   : > { %v3071_v16 = vrot.slane %v3063_v45, %v4459_v1  ;;  %v3078_v59 = vrot.slane %v3064_v55, %v4459_v1 }
0x12b2   : > { %v3079_v60 = vcombine.low %v3055_v56, %v3071_v16  ;;  %v3080_v61 = vcombine.high %v3055_v56, %v3071_v16  ;;  %v3095_v62 = vcombine.low %v3062_v58, %v3078_v59  ;;  %v3096_v2 = vcombine.high %v3062_v58, %v3078_v59  ;;  %v3935_v58 = vld [vmem:[%s4785_s5 + $0x20] sm:$0xff]   ;;  %v3936_v16 = vld [vmem:[%s4785_s5 + $0x28] sm:$0xff]  }
0x12b4   : > { %v3087_v4 = vrot.slane %v3079_v60, %v4462_v7  ;;  %v3094_v5 = vrot.slane %v3080_v61, %v4462_v7  ;;  %v3103_v6 = vrot.slane %v3095_v62, %v4462_v7  ;;  %v3110_v9 = vrot.slane %v3096_v2, %v4462_v7 }
0x12b5   : > { %v3285_v2 = vrot.slane %v4574_v63, %v1746_v26 }
0x12b6   : > { %v3115_v10 = vcombine.low %v3087_v4, %v3094_v5  ;;  %v3610_v12 = vcombine.high %v3087_v4, %v3094_v5  ;;  %v3131_v13 = vcombine.low %v3103_v6, %v3110_v9  ;;  %v3611_v18 = vcombine.high %v3103_v6, %v3110_v9  ;;  %v3937_v6 = vld [vmem:[%s4785_s5 + $0x30] sm:$0xff]  }
0x12b8   : > { %v3122_v19 = vrot.slane %v3115_v10, %v4459_v1  ;;  %v3130_v20 = vrot.slane %v3610_v12, %v4459_v1  ;;  %v3138_v22 = vrot.slane %v3131_v13, %v4459_v1  ;;  %v3146_v15 = vrot.slane %v3611_v18, %v4459_v1 }
0x12ba   : > { %v3148_v23 = vcombine.high %v3122_v19, %v3130_v20  ;;  %v3164_v24 = vcombine.high %v3138_v22, %v3146_v15  ;;  %v3147_v27 = vcombine.low %v3122_v19, %v3130_v20  ;;  %v3163_v28 = vcombine.low %v3138_v22, %v3146_v15 }
0x12bc   : > { %v3162_v29 = vrot.slane %v3148_v23, %v4462_v7  ;;  %v3178_v30 = vrot.slane %v3164_v24, %v4462_v7  ;;  %v3155_v31 = vrot.slane %v3147_v27, %v4462_v7  ;;  %v3171_v32 = vrot.slane %v3163_v28, %v4462_v7 }
0x12be   : > { %v3181_v33 = vcombine.low %v3162_v29, %v3178_v30  ;;  %v3180_v34 = vcombine.high %v3155_v31, %v3171_v32  ;;  %v3179_v35 = vcombine.low %v3155_v31, %v3171_v32  ;;  %v3182_v1 = vcombine.high %v3162_v29, %v3178_v30 }
0x12c0   : > { %3188 = vrot.lane.b32.xlu0 %v3181_v33, %s4122_s25  ;;  %3184 = vrot.lane.b32.xlu1 %v3180_v34, %s4810_s10  ;;  %s357_s25 = scalar_lea.vmem [#allocation7], %s4323_s12 }
0x12c1   : > { %s3456_s15 = sshll.u32 %s357_s25, 4  ;;  %s4737_s15 = int_to_ptr.vmem [resolvable:$true] %s3456_s15 }
0x12c2   : > { %s4039_s12 = scalar_lea.vmem %s4737_s15, 128  ;;  %p4046_p8 = scmp.lt.s32.totalorder %s4737_s15, %s4044_s21 }
0x12c3   : > { %p4040_p13 = scmp.ne.s32.totalorder %s4737_s15, %s4039_s12  ;;  %p4047_p9 = scmp.lt.s32.totalorder %s4045_s20, %s4039_s12 }
0x12c4   : > { %3192 = vrot.lane.b32.xlu1 %v3182_v1, %s4811_s22  ;;  %s3640_s22 = sshll.u32 %s4193_s9, 7  ;;  %s3443_s9 = scalar_lea.sflag [#allocation4], %s4320_s26 }
0x12c5   : > { %s4735_s14 = scalar_lea.hbm %s4788_s8, %s3640_s22  ;;  %p4041_p7 = pnand %p4040_p13, %p4812_p3 }
0x12c6   : > { %p4048_p0 = por %p4047_p9, %p4046_p8 }
0x12c7   : > { %p4042_p5 = pneg %p4041_p7 }
0x12c9   : > { %p4049_p1 = pnand %p4048_p0, %p4042_p5 }
0x1332   : > { %v3185_v36 = vpop.permute.xlu1 %3184  ;;  %v3189_v37 = vpop.permute.xlu0 %3188 }
0x1333   : > { %v3195_v38 = vsel %vm603_vm2, %v3179_v35, %v3185_v36 }
0x1334   : > { %v3196_v40 = vsel %vm1657_vm3, %v3195_v38, %v3189_v37 }
0x1336   : > { %v3193_v39 = vpop.permute.xlu1 %3192 }
0x1337   : > { %v3197_v41 = vsel %vm1659_vm4, %v3196_v40, %v3193_v39 }
0x1338   : > { %v3198_v7 = vpack.c.bf16 %v3197_v41, %v3197_v41 }
0x133a   : > { %3832 = vmatmul.mubr.msk.bf16.vlgmr.msra.gmra.mrb[20].mxu0 %vm365_vm0, %v3198_v7 }
0x133b   : > { %3851 = vmatprep.mubr.msk.bf16.mxu0 %vm4114_vm1, %v4113_v8  ;;  %3844 = vmatpush3.bf16.msra.mxu0 %v3935_v58 }
0x133c   : > { %3845 = vmatprep.subr.bf16.mxu0 %v4113_v8 }
0x133f   : > { %3846 = vmatpush3.bf16.msra.mxu0 %v3936_v16 }
0x1340   : > { %3847 = vmatprep.subr.bf16.mxu0 %v4113_v8 }
0x1343   : > { %3848 = vmatpush3.bf16.msra.mxu0 %v3937_v6 }
0x1344   : > { %3849 = vmatprep.subr.bf16.mxu0 %v4113_v8  ;;  %v3372_v8 = vrot.slane %v4574_v63, %v1831_v43 }
0x140d   : > { %v3257_v44 = vpop.f32.mrb[20].mxu0 }
0x140e   : > { %v3258_v46 = vadd.f32 %v3257_v44, %v3207_v42  ;;  %v3833_v47 = vpop.f32.mrb[21].mxu0 }
0x140f   : > { %v3260_v48 = vpop.f32.mrb[22].mxu0 }
0x1410   : > { %v3263_v49 = vadd.f32 %v3258_v46, %v4557_v50  ;;  %v3834_v51 = vpop.f32.mrb[23].mxu0  ;;  %v3934_v50 = vld [vmem:[%s4784_s4 + $0x18] sm:$0xff]  }
0x1411   : > { %3838 = vmatpush3.bf16.msra.mxu1 %v3934_v50 }
0x1412   : > { %v3264_v52 = vsel %vm365_vm0, %v3263_v49, 0.0 }
0x1413   : > { %3265 = vadd.xlane.f32.xlu1 %v3264_v52 }
0x1424   : > { %3309 = vrot.lane.b32.xlu1 %v4590_v0, %s4125_s19  ;;  %v3296_v0 = vrot.slane %v4586_v11, %v4368_v17  ;;  %v3280_v17 = vrot.slane %v4574_v63, %v1741_v21  ;;  %v3938_v21 = vld [vmem:[%s4785_s5 + $0x38] sm:$0xff]  }
0x1425   : > { %3850 = vmatpush3.bf16.msra.mxu0 %v3938_v21 }
0x14a0   : > { %v3266_v53 = vpop.xlane.xlu1 %3265 }
0x14a1   : > { %v3267_v54 = vmul.f32 0.03125, %v3266_v53 }
0x14a3   : > { %v3268_v45 = vsub.f32 %v3263_v49, %v3267_v54 }
0x14a4   : > { %v3310_v9 = vpop.permute.xlu1 %3309 }
0x14a5   : > { %v3269_v55 = vmul.f32 %v3268_v45, %v3268_v45 }
0x14a7   : > { %v3270_v56 = vsel %vm365_vm0, %v3269_v55, 0.0 }
0x14a8   : > { %3271 = vadd.xlane.f32.xlu0 %v3270_v56 }
0x14be   : > { %3311 = vrot.lane.b32.xlu0 %v3296_v0, %s4125_s19 }
0x1535   : > { %v3272_v59 = vpop.xlane.xlu0 %3271 }
0x1536   : > { %v3273_v60 = vmul.f32 0.03125, %v3272_v59 }
0x1538   : > { %v3274_v61 = vadd.f32 1e-05, %v3273_v60 }
0x1539   : > { %v3312_v26 = vpop.permute.xlu0 %3311 }
0x153a   : > { %3977 = vrsqrt.f32 %v3274_v61  ;;  %v3313_v10 = vsel %vm365_vm0, %v3310_v9, %v3312_v26 }
0x1544   : > { %v3978_v11 = vpop.eup %3977 }
0x1545   : > { %v3276_v62 = vmul.f32 %v3978_v11, %v3268_v45 }
0x1547   : > { %v3281_v3 = vmul.f32 %v3280_v17, %v3276_v62 }
0x1549   : > { %v3286_v4 = vadd.f32 %v3285_v2, %v3281_v3 }
0x154b   : > { %v3287_v5 = vpack.c.bf16 %v3286_v4, %v3286_v4 }
0x154d   : > { %3840 = vmatmul.mubr.msk.bf16.vlgmr.msra.gmra.mrb[36].mxu1 %vm365_vm0, %v3287_v5 }
0x1620   : > { %v3352_v12 = vpop.f32.mrb[36].mxu1 }
0x1621   : > { %v3353_v13 = vadd.f32 %v3352_v12, %v3313_v10  ;;  %v3841_v18 = vpop.f32.mrb[37].mxu1 }
0x1622   : > { %v3355_v25 = vpop.f32.mrb[38].mxu1 }
0x1623   : > { %v3358_v19 = vmax.f32 %v3353_v13, 0.0  ;;  %v3842_v20 = vpop.f32.mrb[39].mxu1 }
0x1625   : > { %v3359_v22 = vpack.c.bf16 %v3358_v19, %v3358_v19 }
0x1627   : > { %3852 = vmatmul.mubr.msk.bf16.vlgmr.msra.gmra.mrb[24].mxu0 %vm1857_vm5, %v3359_v22 }
0x16fa   : > { %v3434_v15 = vpop.f32.mrb[24].mxu0 }
0x16fb   : > { %v3435_v23 = vadd.f32 %v3434_v15, %v3372_v8  ;;  %v3853_v24 = vpop.f32.mrb[25].mxu0 }
0x16fc   : > { %v3437_v27 = vpop.f32.mrb[26].mxu0 }
0x16fd   : > { %v3440_v28 = vadd.f32 %v3435_v23, %v3263_v49  ;;  %v3854_v29 = vpop.f32.mrb[27].mxu0 }
0x16ff   : > { %3441 = vst.msk [vmem:[%s357_s25] sm:$0xff] %vm365_vm0, %v3440_v28 }
0x1700   : > { %4052 = shalt.err (!%p4049_p1)
}
0x1701   : > { %s4053_s26 = scalar_lea.hbm %s4735_s14, 128  ;;  %s4057_s0 = scalar_lea.hbm %s4788_s8, 256 }
0x1702   : > { %p4054_p11 = scmp.ne.s32.totalorder %s4735_s14, %s4053_s26  ;;  %p4058_p4 = scmp.lt.u32.totalorder %s4735_s14, %s4788_s8 }
0x1703   : > { %p4059_p10 = scmp.lt.u32.totalorder %s4057_s0, %s4053_s26  ;;  %p4061_p13 = scmp.lt.u32.totalorder %s4053_s26, %s4735_s14 }
0x1704   : > { %p4055_p12 = pnand %p4054_p11, %p4812_p3 }
0x1705   : > { %p4060_p6 = por %p4059_p10, %p4058_p4 }
0x1706   : > { %p4056_p2 = pneg %p4055_p12 }
0x1707   : > { %p4062_p7 = por %p4061_p13, %p4060_p6 }
0x1709   : > { %p4063_p5 = pnand %p4062_p7, %p4056_p2 }
0x170b   : > { %4066 = shalt.err (!%p4063_p5)
}
0x170c   : > { %3859 = dma.vmem_to_hbm [thread:$0]  (%p4812_p3), %s4737_s15, 128, %s4735_s14, %s3443_s9  }
0x170d PF: > { %s3468_s25 = sand.u32 1, %s4097_s27   ;;  %p4813_p8 = scmp.ne.s32.totalorder %s4800_s18, 0 }
0x170e   : > { %p4814_p9 = scmp.ge.s32.totalorder %s4109_s30, 2  ;;  %s3469_s16 = scalar_lea.sflag [#allocation4], %s3468_s25 }
0x1710   : > { %p3869_p0 = pnand %p4814_p9, %p4813_p8 }
0x1712   : > { %4092 = dma.done.wait (!%p3869_p0), %s3469_s16, 128  }
0x1713   : > { %4094 = vsyncadd (!%p3869_p0), %s3469_s16, 4294967168  ;;  %s4815_s24 = sld [smem:[#allocation11_spill]]  ;;  %p24_p1 = scmp.ge.s32.totalorder %s4197_s11, 4  }
0x1714   : > { %s4816_s27 = smov %s4101_s28  ;;  %s4817_s28 = smov %s4105_s29 }
0x1715   : > { %s4819_s30 = smov %s4197_s11  ;;  %26 = sbr.rel (!%p24_p1) target bundleno = 9 (0x9), region = 116 }
0x1719   : > { %s4818_s29 = smov %s4815_s24 }
0x171c   :  { %3474 = vsyncpa [#allocation3], 1 }
0x171d   :  { %3476 = vsyncpa [#allocation3 + $0x1], 1 }
0x171e   :  { %3477 = vsyncpa [#allocation6], 1 }
0x171f   :  { %3479 = vsyncpa [#allocation6 + $0x1], 1 }
0x1720   :  { %3480 = vsyncpa [#allocation4], 1 }
0x1721   :  { %3482 = vsyncpa [#allocation4 + $0x1], 1 }

</bundles_post_ra>
